<compile_context>
chip_gen: v7x
topology: tpu7x:2x2x1
jax: 0.10.0
libtpu: 0.0.40
codegen_flags: <defaults>
</compile_context>

<pallas_src>
import jax
import jax.numpy as jnp
from jax.experimental import pallas as pl
from jax.experimental.pallas import tpu as pltpu

TILE_H = 256          # h_dim streaming tile (multiple of 128)
N_CORE_BLOCKS = 2     # outer 'parallel' axis: splits the weight stream across TCs on v7x


def _round_up(n, m):
    return ((n + m - 1) // m) * m


# ---- kernel ------------------------------------------------------------------
def netd_kernel(x_ref, w1_ref, b1_ref, w2_ref, out_ref):
    # x_ref : (B, Xp)       f32  (same block every step -> DMA'd once, resident)
    # w1_ref: (Xp, TILE_H)  bf16 (tile-major slab -> one contiguous DMA per step)
    # b1_ref: (1, TILE_H)   f32
    # w2_ref: (TILE_H, Ep)  bf16 (contiguous row slab of fused-head weight)
    # out_ref:(B, Ep)       f32  accumulator, resident across the inner 'arbitrary' axis
    k = pl.program_id(1)

    @pl.when(k == 0)
    def _():
        out_ref[...] = jnp.zeros_like(out_ref)

    h = jnp.dot(x_ref[...].astype(jnp.bfloat16), w1_ref[...],
                preferred_element_type=jnp.float32)
    h = jnp.maximum(h + b1_ref[...], 0.0).astype(jnp.bfloat16)   # bias + ReLU (f32), cast down
    out_ref[...] += jnp.dot(h, w2_ref[...], preferred_element_type=jnp.float32)


# ---- one-time weight packing (load time, NOT in the per-call path) -----------
def prepare_netd_params(w_shared, b_shared, w_gan, b_gan, w_aux, b_aux):
    """Torch layouts: w_shared (H, X), w_gan (1, H), w_aux (Y, H); 1-D biases.
    Returns tile-major, zero-padded bf16 weights + f32 biases (packed once)."""
    H, X = w_shared.shape
    Y = w_aux.shape[0]
    E = 1 + Y                                        # fused heads: [gan | aux]
    Xp = _round_up(X, 128)
    Hp = _round_up(H, TILE_H * N_CORE_BLOCKS)
    Ep = _round_up(E, 128)
    n_tiles = Hp // TILE_H
    bf16, f32 = jnp.bfloat16, jnp.float32

    w1t = jnp.zeros((Xp, Hp), bf16).at[:X, :H].set(
        jnp.transpose(w_shared).astype(bf16))        # (Xp, Hp)
    # tile-major repack: w1p[k] == w1t[:, k*TILE_H:(k+1)*TILE_H], contiguous per step
    w1p = w1t.reshape(Xp, n_tiles, TILE_H).transpose(1, 0, 2)   # (n_tiles, Xp, TILE_H)

    b1p = jnp.zeros((1, Hp), f32).at[0, :H].set(b_shared.astype(f32))

    w_heads = jnp.concatenate([w_gan, w_aux], axis=0)            # (E, H)
    w2p = jnp.zeros((Hp, Ep), bf16).at[:H, :E].set(
        jnp.transpose(w_heads).astype(bf16))                     # (Hp, Ep), row slabs contiguous

    b2 = jnp.concatenate([b_gan, b_aux]).astype(f32)             # (E,)
    return w1p, b1p, w2p, b2


# ---- forward -----------------------------------------------------------------
@jax.jit
def netd_forward(x, w1p, b1p, w2p, b2):
    """x: (B, X_dim) f32. Returns (d_gan (B,1), d_aux (B, y_dim)), both f32."""
    B, X = x.shape
    n_tiles, Xp, _ = w1p.shape
    Hp, Ep = w2p.shape
    E = b2.shape[0]
    n_inner = n_tiles // N_CORE_BLOCKS

    if X != Xp:  # constructor default X_dim=3072 is already 128-aligned -> no-op
        x = jnp.zeros((B, Xp), x.dtype).at[:, :X].set(x)

    cost = pl.CostEstimate(
        flops=2 * B * Xp * Hp + 2 * B * Hp * Ep,
        transcendentals=0,
        bytes_accessed=(x.size * 4 + (w1p.size + w2p.size) * 2
                        + b1p.size * 4 + N_CORE_BLOCKS * B * Ep * 4),
    )

    partials = pl.pallas_call(
        netd_kernel,
        out_shape=jax.ShapeDtypeStruct((N_CORE_BLOCKS, B, Ep), jnp.float32),
        grid=(N_CORE_BLOCKS, n_inner),
        in_specs=[
            pl.BlockSpec((B, Xp), lambda c, k: (0, 0)),                    # x: resident
            pl.BlockSpec((None, Xp, TILE_H),
                         lambda c, k: (c * n_inner + k, 0, 0)),            # W1 tile slab
            pl.BlockSpec((1, TILE_H), lambda c, k: (0, c * n_inner + k)),  # b1 tile
            pl.BlockSpec((TILE_H, Ep), lambda c, k: (c * n_inner + k, 0)), # W2 row slab
        ],
        out_specs=pl.BlockSpec((None, B, Ep), lambda c, k: (c, 0, 0)),
        compiler_params=pltpu.CompilerParams(
            dimension_semantics=("parallel", "arbitrary")),                # 2 TCs on v7x
        cost_estimate=cost,
    )(x, w1p, b1p, w2p)

    out = jnp.sum(partials, axis=0)[:, :E] + b2[None, :]   # tiny (2, B, Ep) epilogue
    return out[:, :1], out[:, 1:]


# ---- reference (pure JAX, PyTorch semantics) ----------------------------------
def netd_reference(x, w_shared, b_shared, w_gan, b_gan, w_aux, b_aux, quantize=False):
    q = (lambda a: a.astype(jnp.bfloat16).astype(jnp.float32)) if quantize else (lambda a: a)
    h = jnp.maximum(q(x) @ q(w_shared).T + b_shared, 0.0)
    h = q(h)  # kernel casts h to bf16 before the head matmul
    return h @ q(w_gan).T + b_gan, h @ q(w_aux).T + b_aux


if __name__ == "__main__":
    key = jax.random.PRNGKey(0)
    kx, kw1, kb1, kwg, kbg, kwa, kba = jax.random.split(key, 7)

    B = 4
    X_DIM, H_DIM, Y_DIM = 3072, 900, 150   # _netD constructor defaults + h_dim

    x = jax.random.normal(kx, (B, X_DIM), dtype=jnp.float32)
    w_shared = jax.random.normal(kw1, (H_DIM, X_DIM), dtype=jnp.float32) * 0.02
    b_shared = jax.random.normal(kb1, (H_DIM,), dtype=jnp.float32) * 0.02
    w_gan = jax.random.normal(kwg, (1, H_DIM), dtype=jnp.float32) * 0.02
    b_gan = jax.random.normal(kbg, (1,), dtype=jnp.float32) * 0.02
    w_aux = jax.random.normal(kwa, (Y_DIM, H_DIM), dtype=jnp.float32) * 0.02
    b_aux = jax.random.normal(kba, (Y_DIM,), dtype=jnp.float32) * 0.02

    # one-time packing (load time)
    w1p, b1p, w2p, b2 = prepare_netd_params(
        w_shared, b_shared, w_gan, b_gan, w_aux, b_aux)

    d_gan, d_aux = netd_forward(x, w1p, b1p, w2p, b2)
    d_gan, d_aux = jax.block_until_ready((d_gan, d_aux))

    assert d_gan.shape == (B, 1), d_gan.shape
    assert d_aux.shape == (B, Y_DIM), d_aux.shape

    # tight check vs a reference that mirrors the kernel's bf16 quantization
    rg_q, ra_q = netd_reference(x, w_shared, b_shared, w_gan, b_gan, w_aux, b_aux,
                                quantize=True)
    assert jnp.allclose(d_gan, rg_q, atol=2e-3, rtol=2e-3), float(
        jnp.max(jnp.abs(d_gan - rg_q)))
    assert jnp.allclose(d_aux, ra_q, atol=2e-3, rtol=2e-3), float(
        jnp.max(jnp.abs(d_aux - ra_q)))

    # loose check vs the full-precision PyTorch semantics
    rg, ra = netd_reference(x, w_shared, b_shared, w_gan, b_gan, w_aux, b_aux)
    assert jnp.allclose(d_gan, rg, atol=5e-2, rtol=5e-2), float(
        jnp.max(jnp.abs(d_gan - rg)))
    assert jnp.allclose(d_aux, ra, atol=5e-2, rtol=5e-2), float(
        jnp.max(jnp.abs(d_aux - ra)))

    print("KERNEL_OK")
</pallas_src>

<mosaic_0001>
module attributes {stable_mosaic.version = 11 : i64} {
  func.func @netd_kernel(%arg0: i32, %arg1: i32, %arg2: memref<4x3072xf32, #tpu.memory_space<vmem>>, %arg3: memref<1x3072x256xbf16, #tpu.memory_space<vmem>>, %arg4: memref<1x256xf32, #tpu.memory_space<vmem>>, %arg5: memref<256x256xbf16, #tpu.memory_space<vmem>>, %arg6: memref<1x4x256xf32, #tpu.memory_space<vmem>>) attributes {dimension_semantics = [#tpu.dimension_semantics<parallel>, #tpu.dimension_semantics<arbitrary>], iteration_bounds = array<i64: 2, 2>, scalar_prefetch = 0 : i64, scratch_operands = 0 : i64, tpu.core_type = #tpu.core_type<tc>, window_params = [{pipeline_mode = #tpu.pipeline_mode<synchronous>, transform_indices = @transform_0, window_bounds = array<i64: 4, 3072>}, {transform_indices = @transform_1, window_bounds = array<i64: 1, 3072, 256>}, {transform_indices = @transform_2, window_bounds = array<i64: 1, 256>}, {transform_indices = @transform_3, window_bounds = array<i64: 256, 256>}, {transform_indices = @transform_4, window_bounds = array<i64: 1, 4, 256>}]} {
    %c0_i32 = arith.constant 0 : i32
    %0 = arith.cmpi eq, %arg1, %c0_i32 : i32
    %1 = arith.extui %0 : i1 to i32
    %c0_i32_0 = arith.constant 0 : i32
    %2 = arith.cmpi ne, %1, %c0_i32_0 : i32
    scf.if %2 {
      %cst_17 = arith.constant 0.000000e+00 : f32
      %22 = vector.broadcast %cst_17 : f32 to vector<4x256xf32>
      %c0_18 = arith.constant 0 : index
      %c0_19 = arith.constant 0 : index
      %c0_20 = arith.constant 0 : index
      %23 = vector.load %arg6[%c0_18, %c0_19, %c0_20] : memref<1x4x256xf32, #tpu.memory_space<vmem>>, vector<1x4x256xf32>
      %24 = vector.shape_cast %23 : vector<1x4x256xf32> to vector<4x256xf32>
      %25 = vector.shape_cast %22 : vector<4x256xf32> to vector<1x4x256xf32>
      tpu.vector_store %arg6[%c0_18, %c0_19, %c0_20], %25 {strides = array<i32>} : memref<1x4x256xf32, #tpu.memory_space<vmem>>, vector<1x4x256xf32>,
    } else {
    }
    %c0 = arith.constant 0 : index
    %c0_1 = arith.constant 0 : index
    %3 = vector.load %arg2[%c0, %c0_1] : memref<4x3072xf32, #tpu.memory_space<vmem>>, vector<4x3072xf32>
    %4 = arith.truncf %3 : vector<4x3072xf32> to vector<4x3072xbf16>
    %c0_2 = arith.constant 0 : index
    %c0_3 = arith.constant 0 : index
    %c0_4 = arith.constant 0 : index
    %5 = vector.load %arg3[%c0_2, %c0_3, %c0_4] : memref<1x3072x256xbf16, #tpu.memory_space<vmem>>, vector<1x3072x256xbf16>
    %6 = vector.shape_cast %5 : vector<1x3072x256xbf16> to vector<3072x256xbf16>
    %cst = arith.constant dense<0.000000e+00> : vector<4x256xf32>
    %7 = tpu.matmul %4, %6, %cst {dimension_numbers = #tpu.dot_dimension_numbers<[1], [0], [0], [1], [0, 0, 1, 1], [], []>} : vector<4x3072xbf16>, vector<3072x256xbf16>, vector<4x256xf32> -> vector<4x256xf32>
    %c0_5 = arith.constant 0 : index
    %c0_6 = arith.constant 0 : index
    %8 = vector.load %arg4[%c0_5, %c0_6] : memref<1x256xf32, #tpu.memory_space<vmem>>, vector<1x256xf32>
    %9 = vector.broadcast %8 : vector<1x256xf32> to vector<4x256xf32>
    %10 = arith.addf %7, %9 : vector<4x256xf32>
    %cst_7 = arith.constant 0.000000e+00 : f32
    %11 = vector.broadcast %cst_7 : f32 to vector<4x256xf32>
    %12 = arith.maximumf %10, %11 : vector<4x256xf32>
    %13 = arith.truncf %12 : vector<4x256xf32> to vector<4x256xbf16>
    %c0_8 = arith.constant 0 : index
    %c0_9 = arith.constant 0 : index
    %c0_10 = arith.constant 0 : index
    %14 = vector.load %arg6[%c0_8, %c0_9, %c0_10] : memref<1x4x256xf32, #tpu.memory_space<vmem>>, vector<1x4x256xf32>
    %15 = vector.shape_cast %14 : vector<1x4x256xf32> to vector<4x256xf32>
    %c0_11 = arith.constant 0 : index
    %c0_12 = arith.constant 0 : index
    %16 = vector.load %arg5[%c0_11, %c0_12] : memref<256x256xbf16, #tpu.memory_space<vmem>>, vector<256x256xbf16>
    %cst_13 = arith.constant dense<0.000000e+00> : vector<4x256xf32>
    %17 = tpu.matmul %13, %16, %cst_13 {dimension_numbers = #tpu.dot_dimension_numbers<[1], [0], [0], [1], [0, 0, 1, 1], [], []>} : vector<4x256xbf16>, vector<256x256xbf16>, vector<4x256xf32> -> vector<4x256xf32>
    %18 = arith.addf %15, %17 : vector<4x256xf32>
    %c0_14 = arith.constant 0 : index
    %c0_15 = arith.constant 0 : index
    %c0_16 = arith.constant 0 : index
    %19 = vector.load %arg6[%c0_14, %c0_15, %c0_16] : memref<1x4x256xf32, #tpu.memory_space<vmem>>, vector<1x4x256xf32>
    %20 = vector.shape_cast %19 : vector<1x4x256xf32> to vector<4x256xf32>
    %21 = vector.shape_cast %18 : vector<4x256xf32> to vector<1x4x256xf32>
    tpu.vector_store %arg6[%c0_14, %c0_15, %c0_16], %21 {strides = array<i32>} : memref<1x4x256xf32, #tpu.memory_space<vmem>>, vector<1x4x256xf32>,
    return
  }
  func.func @transform_0(%arg0: i32, %arg1: i32) -> (i32, i32) {
    %c0_i32 = arith.constant 0 : i32
    %c0_i32_0 = arith.constant 0 : i32
    %c0_i32_1 = arith.constant 0 : i32
    return %c0_i32, %c0_i32_0 : i32, i32
  }
  func.func @transform_1(%arg0: i32, %arg1: i32) -> (i32, i32, i32) {
    %c2_i32 = arith.constant 2 : i32
    %0 = arith.muli %arg0, %c2_i32 : i32
    %1 = arith.addi %0, %arg1 : i32
    %c0_i32 = arith.constant 0 : i32
    %c0_i32_0 = arith.constant 0 : i32
    %c0_i32_1 = arith.constant 0 : i32
    return %1, %c0_i32, %c0_i32_0 : i32, i32, i32
  }
  func.func @transform_2(%arg0: i32, %arg1: i32) -> (i32, i32) {
    %c2_i32 = arith.constant 2 : i32
    %0 = arith.muli %arg0, %c2_i32 : i32
    %1 = arith.addi %0, %arg1 : i32
    %c0_i32 = arith.constant 0 : i32
    %c0_i32_0 = arith.constant 0 : i32
    return %c0_i32, %1 : i32, i32
  }
  func.func @transform_3(%arg0: i32, %arg1: i32) -> (i32, i32) {
    %c2_i32 = arith.constant 2 : i32
    %0 = arith.muli %arg0, %c2_i32 : i32
    %1 = arith.addi %0, %arg1 : i32
    %c0_i32 = arith.constant 0 : i32
    %c0_i32_0 = arith.constant 0 : i32
    return %1, %c0_i32 : i32, i32
  }
  func.func @transform_4(%arg0: i32, %arg1: i32) -> (i32, i32, i32) {
    %c0_i32 = arith.constant 0 : i32
    %c0_i32_0 = arith.constant 0 : i32
    %c0_i32_1 = arith.constant 0 : i32
    return %arg0, %c0_i32, %c0_i32_0 : i32, i32, i32
  }
}

</mosaic_0001>

<bundles_post_ra>
// kernel: netd_forward.1
= control target key start
LH: loop header
LB: loop body
LE: loop exit
PB: predicated region body
PF: predicated region fallthrough
CT: control target
= control target key end

     0   :  { %s5835_s0 = inlined_call_operand.hbm [shape: f32[4,3072], index: 0, kind: input, shape index: {}]   ;;  %s5836_s1 = inlined_call_operand.hbm [shape: bf16[4,3072,256], index: 1, kind: input, shape index: {}]   ;;  %s5837_s2 = inlined_call_operand.hbm [shape: f32[1,1024], index: 2, kind: input, shape index: {}]   ;;  %s5838_s3 = inlined_call_operand.hbm [shape: bf16[1024,256], index: 3, kind: input, shape index: {}]   ;;  %s5839_s4 = inlined_call_operand.vmem [shape: f32[2,4,256], index: 4, kind: output, shape index: {}]  }
   0x1   :  { %5855 = sst [smem:[#allocation17_spill]] %s5836_s1 }
   0x2   :  { %9 = vsyncpa [#allocation3], 0 }
   0x3   :  { %10 = vsyncpa [#allocation5], 0 }
   0x4   :  { %12 = vsyncpa [#allocation5 + $0x1], 0 }
   0x5   :  { %13 = vsyncpa [#allocation8], 0 }
   0x6   :  { %15 = vsyncpa [#allocation8 + $0x1], 0  ;;  %s5068_s15 = smov 0   ;;  %s5070_s16 = smov 0  }
   0x7   :  { %s5072_s17 = smov 0   ;;  %s5074_s18 = smov 0  }
   0x8   :  { %s5076_s19 = smov 0   ;;  %s5078_s20 = smov 0  }
   0x9   :  { %s5080_s21 = smov 0   ;;  %s5082_s22 = smov 0  }
   0xa LB: > { %5856 = sst [smem:[#allocation12_spill]] %s5026_s20  ;;  %s30_s23 = sadd.s32 1, %s5026_s20  ;;  %s5034_s22 = sphi %s5082_s22, %s21_s22   ;;  %s5030_s21 = sphi %s5080_s21, %s5881_s21   ;;  %s5026_s20 = sphi %s5078_s20, %s5880_s20   ;;  %s5022_s19 = sphi %s5076_s19, %s5886_s19   ;;  %s5018_s18 = sphi %s5074_s18, %s5885_s18   ;;  %s5014_s17 = sphi %s5072_s17, %s5884_s17   ;;  %s5010_s16 = sphi %s5070_s16, %s5883_s16   ;;  %s5006_s15 = sphi %s5068_s15, %s5882_s15  }
   0xb   : > { %5857 = sst [smem:[#allocation13_spill]] %s5030_s21  ;;  %s33_s24 = sadd.s32 1, %s5030_s21 }
   0xc   : > { %p31_p0 = scmp.ge.s32.totalorder %s30_s23, 2  ;;  %s3615_s25 = sshll.u32 %s5030_s21, 1 }
   0xd   : > { %s5112_s26 = sadd.s32 %s5026_s20, %s3615_s25  ;;  %s65_s27 = sadd.s32 1, %s5014_s17 }
   0xe   : > { %s5888_s23 = smov (%p31_p0, %s30_s23), 0  ;;  %s5890_s24 = smov (!%p31_p0, %s33_s24), %s5030_s21 }
   0xf   : > { %5858 = sst [smem:[#allocation14_spill]] %s5888_s23  ;;  %p72_p1 = scmp.ne.s32.totalorder %s5014_s17, %s5010_s16 }
  0x10   : > { %p73_p2 = scmp.eq.s32.totalorder %s5034_s22, 0  ;;  %p35_p3 = scmp.ge.s32.totalorder %s5890_s24, 2 }
  0x11   : > { %p4136_p5 = scmp.lt.s32.totalorder %s5034_s22, 4  ;;  %s199_s29 = sand.u32 1, %s5034_s22  }
  0x12   : > { %p5121_p4 = por %p73_p2, %p72_p1  ;;  %s5892_s24 = smov (%p35_p3, %s5890_s24), 0 }
  0x13   : > { %5860 = sst [smem:[#allocation15_spill]] %s5892_s24  ;;  %s5130_s30 = sand.u32 1, %s5014_s17  }
  0x14   : > { %s3616_s5 = sshll.u32 %s5892_s24, 1  ;;  %s4108_s7 = smul.u32 3072, %s5130_s30 }
  0x15   : > { %s61_s6 = sadd.s32 %s3616_s5, %s5888_s23  ;;  %s4109_s9 = smul.u32 49152, %s5112_s26 }
  0x16   : > { %s62_s8 = ssub.s32 %s5112_s26, %s61_s6  ;;  %s5861_s1 = sld [smem:[#allocation17_spill]] }
  0x17   : > { %p63_p6 = scmp.eq.s32.totalorder %s62_s8, 0  ;;  %s203_s13 = scalar_lea.vmem [#allocation4], %s4108_s7 }
  0x18   : > { %s212_s14 = sshll.u32 %s203_s13, 4  ;;  %p5151_p7 = pnand %p4136_p5, %p5121_p4  ;;  %s5145_s14 = int_to_ptr.vmem [resolvable:$true] %s212_s14 }
  0x19   : > { %s5143_s25 = scalar_select %p63_p6, %s5014_s17, %s65_s27  }
  0x1a   : > { %s5863_s5 = scalar_select %p5151_p7, 1, 0 }
  0x1b   : > { %5862 = sst [smem:[#allocation16_spill]] %s5143_s25  ;;  %s5155_s6 = scalar_lea.sflag [#allocation5], %s199_s29 }
  0x1c   : > { %s5140_s12 = scalar_lea.hbm %s5861_s1, %s4109_s9  ;;  %p5161_p9 = pneg %p5151_p7 }
  0x1d   : > { %s4842_s8 = scalar_lea.hbm %s5140_s12, 49152  ;;  %s4847_s7 = scalar_lea.hbm %s5861_s1, 196608 }
  0x1e   : > { %p4843_p8 = scmp.ne.s32.totalorder %s5140_s12, %s4842_s8  ;;  %p4848_p12 = scmp.lt.u32.totalorder %s5140_s12, %s5861_s1 }
  0x1f   : > { %s5864_s9 = scalar_select %p5161_p9, 1, 0 }
  0x20   : > { %p4845_p10 = pnand %p5161_p9, %p4843_p8  ;;  %p4849_p13 = scmp.lt.u32.totalorder %s4847_s7, %s4842_s8 }
  0x21   : > { %p4851_p1 = scmp.lt.u32.totalorder %s4842_s8, %s5140_s12 }
  0x22   : > { %p4846_p11 = pneg %p4845_p10  ;;  %p4850_p0 = por %p4849_p13, %p4848_p12 }
  0x24   : > { %p4852_p2 = por %p4851_p1, %p4850_p0 }
  0x26   : > { %p4853_p3 = pnand %p4852_p2, %p4846_p11 }
  0x28   : > { %4856 = shalt.err (!%p4853_p3)
}
  0x29   : > { %s4857_s29 = scalar_lea.vmem %s5145_s14, 49152  ;;  %s5036_s13 = smov [#allocation4]  }
  0x2a   : > { %p4858_p4 = scmp.ne.s32.totalorder %s5145_s14, %s4857_s29  ;;  %s4862_s27 = sshll.u32 %s5036_s13, 4  ;;  %s4863_s27 = int_to_ptr.vmem [resolvable:$false] %s4862_s27 }
  0x2b   : > { %s4864_s28 = scalar_lea.vmem %s4863_s27, 98304  ;;  %p4865_p8 = scmp.lt.s32.totalorder %s5145_s14, %s4863_s27 }
  0x2c   : > { %p4860_p5 = pnand %p4858_p4, %p5161_p9  ;;  %p4866_p10 = scmp.lt.s32.totalorder %s4864_s28, %s4857_s29 }
  0x2e   : > { %p4861_p6 = pneg %p4860_p5  ;;  %p4867_p12 = por %p4866_p10, %p4865_p8 }
  0x30   : > { %p4868_p13 = pnand %p4867_p12, %p4861_p6 }
  0x32   : > { %4871 = shalt.err (!%p4868_p13)
}
  0x33   : > { %s5841_s8 = smov 128   ;;  %s5842_s7 = smov 8  }
  0x34   : > { %4128 = dma.hbm_to_vmem [thread:$0]  (!%p5151_p7), %s5140_s12, 49152, %s5145_s14, %s5155_s6, %s5841_s8, %s5841_s8, %s5842_s7  }
  0x35   : > { %s5840_s10 = sadd.s32 4294967295, %s5034_s22   ;;  %p78_p11 = scmp.ne.s32.totalorder %s5010_s16, %s5006_s15 }
  0x36   : > { %p5193_p0 = scmp.eq.s32.totalorder %s5840_s10, 0  ;;  %p3621_p1 = scmp.ge.s32.totalorder %s5034_s22, 1 }
  0x37   : > { %p175_p2 = scmp.lt.s32.totalorder %s5034_s22, 5  ;;  %s5039_s15 = smov [#allocation2]  }
  0x38   : > { %s5865_s11 = scalar_select %p5193_p0, 1, 0 }
  0x39   : > { %p5201_p3 = por %p5193_p0, %p78_p11  ;;  %p5205_p4 = pnand %p3621_p1, %p175_p2 }
  0x3a   : > { %s188_s12 = sshll.u32 %s5039_s15, 4  ;;  %s3626_s14 = sshll.u32 %s5130_s30, 1  ;;  %s189_s12 = int_to_ptr.vmem [resolvable:$true] %s188_s12 }
  0x3b   : > { %s5866_s29 = scalar_select %p5201_p3, 1, 0 }
  0x3c   : > { %s5867_s13 = scalar_select %p5205_p4, 1, 0 }
  0x3d   : > { %p4121_p5 = pneg %p5205_p4  ;;  %s4060_s27 = sshll.u32 %s5112_s26, 5 }
  0x3e   : > { %s5222_s7 = scalar_lea.hbm %s5837_s2, %s4060_s27  ;;  %s226_s1 = scalar_lea.vmem [#allocation6], %s3626_s14 }
  0x3f   : > { %p5215_p6 = pnand %p4121_p5, %p5193_p0  ;;  %s236_s24 = sshll.u32 %s226_s1, 4  ;;  %s5224_s24 = int_to_ptr.vmem [resolvable:$true] %s236_s24 }
  0x40   : > { %s4872_s21 = scalar_lea.hbm %s5835_s0, 1536 }
  0x41   : > { %p4873_p8 = scmp.ne.s32.totalorder %s5835_s0, %s4872_s21  ;;  %p4874_p10 = pneg %p5215_p6 }
  0x42   : > { %p4879_p11 = scmp.lt.u32.totalorder %s4872_s21, %s5835_s0 }
  0x43   : > { %p4875_p12 = pnand %p4874_p10, %p4873_p8 }
  0x45   : > { %p4876_p13 = pneg %p4875_p12 }
  0x47   : > { %p4881_p1 = pnand %p4879_p11, %p4876_p13 }
  0x49   : > { %4884 = shalt.err (!%p4881_p1)
}
  0x4a   : > { %s4885_s1 = scalar_lea.vmem %s189_s12, 1536  ;;  %p4893_p0 = scmp.lt.s32.totalorder %s189_s12, %s189_s12 }
  0x4b   : > { %p4886_p2 = scmp.ne.s32.totalorder %s189_s12, %s4885_s1  ;;  %p4894_p4 = scmp.lt.s32.totalorder %s4885_s1, %s4885_s1 }
  0x4d   : > { %p4888_p5 = pnand %p4886_p2, %p4874_p10  ;;  %p4895_p7 = por %p4894_p4, %p4893_p0 }
  0x4f   : > { %p4889_p3 = pneg %p4888_p5 }
  0x51   : > { %p4896_p9 = pnand %p4895_p7, %p4889_p3 }
  0x53   : > { %4899 = shalt.err (!%p4896_p9)
}
  0x54   : > { %4124 = dma.hbm_to_vmem [thread:$0]  (!%p5215_p6), %s5835_s0, 1536, %s189_s12, [#allocation3]  }
  0x55   : > { %s4900_s21 = scalar_lea.hbm %s5222_s7, 32  ;;  %p5869_p10 = scmp.ne.s32.totalorder %s5864_s9, 0 }
  0x56   : > { %p4901_p8 = scmp.ne.s32.totalorder %s5222_s7, %s4900_s21  ;;  %s4905_s27 = scalar_lea.hbm %s5837_s2, 128 }
  0x57   : > { %p4906_p7 = scmp.lt.u32.totalorder %s5222_s7, %s5837_s2  ;;  %p4907_p9 = scmp.lt.u32.totalorder %s4905_s27, %s4900_s21 }
  0x58   : > { %p4903_p12 = pnand %p4901_p8, %p5869_p10  ;;  %p4909_p3 = scmp.lt.u32.totalorder %s4900_s21, %s5222_s7 }
  0x59   : > { %p4908_p0 = por %p4907_p9, %p4906_p7 }
  0x5a   : > { %p4904_p13 = pneg %p4903_p12 }
  0x5b   : > { %p4910_p4 = por %p4909_p3, %p4908_p0 }
  0x5d   : > { %p4911_p11 = pnand %p4910_p4, %p4904_p13 }
  0x5f   : > { %4914 = shalt.err (!%p4911_p11)
}
  0x60   : > { %s4915_s12 = scalar_lea.vmem %s5224_s24, 32  ;;  %s5040_s8 = smov [#allocation6]  }
  0x61   : > { %p4916_p6 = scmp.ne.s32.totalorder %s5224_s24, %s4915_s12  ;;  %s4920_s10 = sshll.u32 %s5040_s8, 4  ;;  %s4921_s10 = int_to_ptr.vmem [resolvable:$false] %s4920_s10 }
  0x62   : > { %s4922_s1 = scalar_lea.vmem %s4921_s10, 64  ;;  %p4923_p5 = scmp.lt.s32.totalorder %s5224_s24, %s4921_s10 }
  0x63   : > { %p4918_p1 = pnand %p4916_p6, %p5869_p10  ;;  %p4924_p8 = scmp.lt.s32.totalorder %s4922_s1, %s4915_s12 }
  0x65   : > { %p4919_p2 = pneg %p4918_p1  ;;  %p4925_p12 = por %p4924_p8, %p4923_p5 }
  0x67   : > { %p4926_p7 = pnand %p4925_p12, %p4919_p2 }
  0x69   : > { %4929 = shalt.err (!%p4926_p7)
}
  0x6a   : > { %p5870_p13 = scmp.ne.s32.totalorder %s5863_s5, 0  ;;  %s3630_s20 = sshll.u32 %s5130_s30, 8 }
  0x6b   : > { %s4062_s23 = sshll.u32 %s5112_s26, 12  ;;  %s247_s27 = scalar_lea.vmem [#allocation7], %s3630_s20 }
  0x6c   : > { %4131 = dma.hbm_to_vmem [thread:$0]  (!%p5870_p13), %s5222_s7, 32, %s5224_s24, %s5155_s6  }
  0x6d   : > { %s5269_s14 = scalar_lea.hbm %s5838_s3, %s4062_s23  ;;  %s257_s15 = sshll.u32 %s247_s27, 4  ;;  %s5271_s15 = int_to_ptr.vmem [resolvable:$true] %s257_s15 }
  0x6e   : > { %s244_s28 = scalar_lea.sflag [#allocation8], %s5130_s30  ;;  %s4930_s12 = scalar_lea.hbm %s5269_s14, 4096 }
  0x6f   : > { %p4931_p9 = scmp.ne.s32.totalorder %s5269_s14, %s4930_s12  ;;  %s4935_s6 = scalar_lea.hbm %s5838_s3, 16384 }
  0x70   : > { %p4936_p4 = scmp.lt.u32.totalorder %s5269_s14, %s5838_s3  ;;  %p4937_p11 = scmp.lt.u32.totalorder %s4935_s6, %s4930_s12 }
  0x71   : > { %p4933_p0 = pnand %p4931_p9, %p5869_p10  ;;  %p4939_p1 = scmp.lt.u32.totalorder %s4930_s12, %s5269_s14 }
  0x72   : > { %p4938_p6 = por %p4937_p11, %p4936_p4 }
  0x73   : > { %p4934_p3 = pneg %p4933_p0 }
  0x74   : > { %p4940_p2 = por %p4939_p1, %p4938_p6 }
  0x76   : > { %p4941_p5 = pnand %p4940_p2, %p4934_p3 }
  0x78   : > { %4944 = shalt.err (!%p4941_p5)
}
  0x79   : > { %s4945_s10 = scalar_lea.vmem %s5271_s15, 4096  ;;  %s5041_s1 = smov [#allocation7]  }
  0x7a   : > { %p4946_p8 = scmp.ne.s32.totalorder %s5271_s15, %s4945_s10  ;;  %s4950_s20 = sshll.u32 %s5041_s1, 4  ;;  %s4951_s20 = int_to_ptr.vmem [resolvable:$false] %s4950_s20 }
  0x7b   : > { %s4952_s23 = scalar_lea.vmem %s4951_s20, 8192  ;;  %p4953_p9 = scmp.lt.s32.totalorder %s5271_s15, %s4951_s20 }
  0x7c   : > { %p4948_p12 = pnand %p4946_p8, %p5869_p10  ;;  %p4954_p0 = scmp.lt.s32.totalorder %s4952_s23, %s4945_s10 }
  0x7e   : > { %p4949_p7 = pneg %p4948_p12  ;;  %p4955_p4 = por %p4954_p0, %p4953_p9 }
  0x80   : > { %p4956_p11 = pnand %p4955_p4, %p4949_p7 }
  0x82   : > { %4959 = shalt.err (!%p4956_p11)
}
  0x83   : > { %s5871_s21 = smov 8   ;;  %s5872_s25 = smov 128  }
  0x84   : > { %4134 = dma.hbm_to_vmem [thread:$0]  (!%p5870_p13), %s5269_s14, 4096, %s5271_s15, %s244_s28, %s5872_s25, %s5872_s25, %s5871_s21  }
  0x85   : > { %p5873_p10 = scmp.ne.s32.totalorder %s5867_s13, 0 }
  0x86   : > { %p5874_p3 = scmp.ne.s32.totalorder (!%p5873_p10), %s5865_s11, 0 }
  0x87   : > { %269 = sbr.rel (%p5873_p10) target bundleno = 1049 (0x419), region = 36 }
  0x8e   : > { %4993 = dma.done.wait (%p5874_p3), [#allocation3], 1536  }
  0x8f   : > { %4995 = vsyncadd (%p5874_p3), [#allocation3], 4294965760  ;;  %s5875_s9 = sadd.s32 4294967295, %s5034_s22   ;;  %s277_s27 = sand.u32 1, %s5010_s16  }
  0x90   : > { %s275_s5 = sand.u32 1, %s5875_s9   ;;  %s4110_s12 = smul.u32 3072, %s277_s27 }
  0x91   : > { %s276_s30 = scalar_lea.sflag [#allocation5], %s275_s5  ;;  %p5876_p13 = scmp.ne.s32.totalorder %s5866_s29, 0 }
  0x92   : > { %s5309_s24 = scalar_lea.vmem [#allocation4], %s4110_s12 }
  0x93   : > { %4997 = dma.done.wait (%p5876_p13), %s276_s30, 49184  }
  0x94   : > { %4999 = vsyncadd (%p5876_p13), %s276_s30, 4294918112  ;;  %s3637_s13 = sshll.u32 %s277_s27, 1  ;;  %s3638_s14 = sshll.u32 %s277_s27, 8 }
  0x95   : > { %s5315_s11 = scalar_lea.vmem [#allocation6], %s3637_s13  ;;  %s294_s15 = scalar_lea.sflag [#allocation8], %s277_s27 }
  0x96   : > { %s5317_s28 = scalar_lea.vmem [#allocation7], %s3638_s14 }
  0x97   : > { %5001 = dma.done.wait (%p5876_p13), %s294_s15, 4096  }
  0x98   : > { %5003 = vsyncadd (%p5876_p13), %s294_s15, 4294963200  ;;  %p340_p6 = scmp.lt.s32.totalorder %s5022_s19, 1  ;;  %p3641_p1 = scmp.ne.s32.totalorder %s5018_s18, 0 }
  0x99   : > { %v5042_v0 = vmov (!%p3641_p1), 0.0  }
  0x9a   : > { %s5894_s19 = smov (!%p340_p6, %s5022_s19), 1  ;;  %348 = sbr.rel (%p3641_p1) target bundleno = 161 (0xa1), region = 56 }
  0x9b   : > { %s4063_s26 = sshll.u32 %s5894_s19, 3 }
  0x9c   : > { %s5328_s8 = scalar_lea.vmem %s5839_s4, %s4063_s26 }
  0x9d   : > { %349 = vst [vmem:[%s5328_s8] sm:$0xff] (!%p3641_p1), %v5042_v0 }
  0xa1 PF: > { %v4206_v1 = vld [vmem:[%s5309_s24 + $0x4] ss:$8 sps:$4 sm:$0xff]   ;;  %v4210_v3 = vld [vmem:[%s5309_s24] ss:$8 sps:$4 sm:$0xff]   ;;  %v4212_v5 = vld [vmem:[%s5309_s24 + $0x14] ss:$8 sps:$4 sm:$0xff]  }
  0xa2   : > { %v4208_v2 = vld [vmem:[%s5309_s24 + $0x504] ss:$8 sps:$4 sm:$0xff]   ;;  %2738 = vmatprep.subr.bf16.mxu1 %v4206_v1  ;;  %v4211_v4 = vld [vmem:[%s5309_s24 + $0x500] ss:$8 sps:$4 sm:$0xff]   ;;  %v4214_v6 = vld [vmem:[%s5309_s24 + $0x514] ss:$8 sps:$4 sm:$0xff]  }
  0xa3   : > { %2943 = vmatprep.subr.bf16.mxu0 %v4208_v2  ;;  %2739 = vmatpush1.bf16.msra.mxu1 %v4210_v3  ;;  %v4216_v7 = vld [vmem:[%s5309_s24 + $0x10] ss:$8 sps:$4 sm:$0xff]   ;;  %v4218_v9 = vld [vmem:[%s5309_s24 + $0x24] ss:$8 sps:$4 sm:$0xff]   ;;  %v4222_v11 = vld [vmem:[%s5309_s24 + $0x20] ss:$8 sps:$4 sm:$0xff]  }
  0xa4   : > { %2944 = vmatpush1.bf16.msra.mxu0 %v4211_v4  ;;  %2740 = vmatprep.subr.bf16.mxu1 %v4212_v5  ;;  %v4217_v8 = vld [vmem:[%s5309_s24 + $0x510] ss:$8 sps:$4 sm:$0xff]   ;;  %v4220_v10 = vld [vmem:[%s5309_s24 + $0x524] ss:$8 sps:$4 sm:$0xff]   ;;  %v4223_v12 = vld [vmem:[%s5309_s24 + $0x520] ss:$8 sps:$4 sm:$0xff]  }
  0xa5   : > { %2945 = vmatprep.subr.bf16.mxu0 %v4214_v6  ;;  %v4224_v13 = vld [vmem:[%s5309_s24 + $0x34] ss:$8 sps:$4 sm:$0xff]   ;;  %v4228_v15 = vld [vmem:[%s5309_s24 + $0x30] ss:$8 sps:$4 sm:$0xff]   ;;  %v4230_v17 = vld [vmem:[%s5309_s24 + $0x44] ss:$8 sps:$4 sm:$0xff]  }
  0xa6   : > { %v4226_v14 = vld [vmem:[%s5309_s24 + $0x534] ss:$8 sps:$4 sm:$0xff]   ;;  %v4229_v16 = vld [vmem:[%s5309_s24 + $0x530] ss:$8 sps:$4 sm:$0xff]   ;;  %v4232_v18 = vld [vmem:[%s5309_s24 + $0x544] ss:$8 sps:$4 sm:$0xff]  }
  0xa7   : > { %2741 = vmatpush1.bf16.msra.mxu1 %v4216_v7  ;;  %v4234_v19 = vld [vmem:[%s5309_s24 + $0x40] ss:$8 sps:$4 sm:$0xff]   ;;  %v4236_v21 = vld [vmem:[%s5309_s24 + $0x54] ss:$8 sps:$4 sm:$0xff]   ;;  %v4240_v23 = vld [vmem:[%s5309_s24 + $0x50] ss:$8 sps:$4 sm:$0xff]  }
  0xa8   : > { %2946 = vmatpush1.bf16.msra.mxu0 %v4217_v8  ;;  %2742 = vmatprep.subr.bf16.mxu1 %v4218_v9  ;;  %v4235_v20 = vld [vmem:[%s5309_s24 + $0x540] ss:$8 sps:$4 sm:$0xff]   ;;  %v4238_v22 = vld [vmem:[%s5309_s24 + $0x554] ss:$8 sps:$4 sm:$0xff]   ;;  %v4241_v24 = vld [vmem:[%s5309_s24 + $0x550] ss:$8 sps:$4 sm:$0xff]  }
  0xa9   : > { %2947 = vmatprep.subr.bf16.mxu0 %v4220_v10  ;;  %v4242_v25 = vld [vmem:[%s5309_s24 + $0x64] ss:$8 sps:$4 sm:$0xff]   ;;  %v4246_v27 = vld [vmem:[%s5309_s24 + $0x60] ss:$8 sps:$4 sm:$0xff]   ;;  %v4248_v29 = vld [vmem:[%s5309_s24 + $0x74] ss:$8 sps:$4 sm:$0xff]  }
  0xaa   : > { %v4244_v26 = vld [vmem:[%s5309_s24 + $0x564] ss:$8 sps:$4 sm:$0xff]   ;;  %v4247_v28 = vld [vmem:[%s5309_s24 + $0x560] ss:$8 sps:$4 sm:$0xff]   ;;  %v4250_v30 = vld [vmem:[%s5309_s24 + $0x574] ss:$8 sps:$4 sm:$0xff]  }
  0xab   : > { %2743 = vmatpush1.bf16.msra.mxu1 %v4222_v11  ;;  %v4252_v31 = vld [vmem:[%s5309_s24 + $0x70] ss:$8 sps:$4 sm:$0xff]   ;;  %v4254_v33 = vld [vmem:[%s5309_s24 + $0x84] ss:$8 sps:$4 sm:$0xff]   ;;  %v4258_v35 = vld [vmem:[%s5309_s24 + $0x80] ss:$8 sps:$4 sm:$0xff]  }
  0xac   : > { %2948 = vmatpush1.bf16.msra.mxu0 %v4223_v12  ;;  %2744 = vmatprep.subr.bf16.mxu1 %v4224_v13  ;;  %v4253_v32 = vld [vmem:[%s5309_s24 + $0x570] ss:$8 sps:$4 sm:$0xff]   ;;  %v4256_v34 = vld [vmem:[%s5309_s24 + $0x584] ss:$8 sps:$4 sm:$0xff]   ;;  %v4259_v36 = vld [vmem:[%s5309_s24 + $0x580] ss:$8 sps:$4 sm:$0xff]  }
  0xad   : > { %2949 = vmatprep.subr.bf16.mxu0 %v4226_v14  ;;  %v4260_v37 = vld [vmem:[%s5309_s24 + $0x94] ss:$8 sps:$4 sm:$0xff]   ;;  %v4264_v39 = vld [vmem:[%s5309_s24 + $0x90] ss:$8 sps:$4 sm:$0xff]   ;;  %v4266_v41 = vld [vmem:[%s5309_s24 + $0xa4] ss:$8 sps:$4 sm:$0xff]  }
  0xae   : > { %v4262_v38 = vld [vmem:[%s5309_s24 + $0x594] ss:$8 sps:$4 sm:$0xff]   ;;  %v4265_v40 = vld [vmem:[%s5309_s24 + $0x590] ss:$8 sps:$4 sm:$0xff]   ;;  %v4268_v42 = vld [vmem:[%s5309_s24 + $0x5a4] ss:$8 sps:$4 sm:$0xff]  }
  0xaf   : > { %2745 = vmatpush1.bf16.msra.mxu1 %v4228_v15  ;;  %v4270_v43 = vld [vmem:[%s5309_s24 + $0xa0] ss:$8 sps:$4 sm:$0xff]   ;;  %v4272_v45 = vld [vmem:[%s5309_s24 + $0xb4] ss:$8 sps:$4 sm:$0xff]   ;;  %v4276_v48 = vld [vmem:[%s5309_s24 + $0xb0] ss:$8 sps:$4 sm:$0xff]  }
  0xb0   : > { %2950 = vmatpush1.bf16.msra.mxu0 %v4229_v16  ;;  %2746 = vmatprep.subr.bf16.mxu1 %v4230_v17  ;;  %v4271_v44 = vld [vmem:[%s5309_s24 + $0x5a0] ss:$8 sps:$4 sm:$0xff]   ;;  %v4274_v46 = vld [vmem:[%s5309_s24 + $0x5b4] ss:$8 sps:$4 sm:$0xff]   ;;  %v4277_v50 = vld [vmem:[%s5309_s24 + $0x5b0] ss:$8 sps:$4 sm:$0xff]  }
  0xb1   : > { %2951 = vmatprep.subr.bf16.mxu0 %v4232_v18  ;;  %v350_v47 = vld [vmem:[#allocation2] sm:$0xff]  ;;  %v355_v51 = vld [vmem:[#allocation2 + $0x28] sm:$0xff]  ;;  %v4284_v59 = vld [vmem:[%s5309_s24 + $0xd4] ss:$8 sps:$4 sm:$0xff]  }
  0xb2   : > { %v374_v49 = vcombine.high %v350_v47, %v350_v47  ;;  %v4278_v52 = vld [vmem:[%s5309_s24 + $0xc4] ss:$8 sps:$4 sm:$0xff]   ;;  %v379_v55 = vcombine.high %v355_v51, %v355_v51  ;;  %v4282_v57 = vld [vmem:[%s5309_s24 + $0xc0] ss:$8 sps:$4 sm:$0xff]   ;;  %v4286_v60 = vld [vmem:[%s5309_s24 + $0x5d4] ss:$8 sps:$4 sm:$0xff]   ;;  %v398_v9 = vpack.c.bf16 %v350_v47, %v350_v47  ;;  %v408_v10 = vpack.c.bf16 %v355_v51, %v355_v51 }
  0xb3   : > { %2747 = vmatpush1.bf16.msra.mxu1 %v4234_v19  ;;  %v4280_v53 = vld [vmem:[%s5309_s24 + $0x5c4] ss:$8 sps:$4 sm:$0xff]   ;;  %v4283_v58 = vld [vmem:[%s5309_s24 + $0x5c0] ss:$8 sps:$4 sm:$0xff]   ;;  %v4288_v61 = vld [vmem:[%s5309_s24 + $0xd0] ss:$8 sps:$4 sm:$0xff]  }
  0xb4   : > { %2952 = vmatpush1.bf16.msra.mxu0 %v4235_v20  ;;  %2748 = vmatprep.subr.bf16.mxu1 %v4236_v21  ;;  %v399_v54 = vpack.c.bf16 %v374_v49, %v374_v49  ;;  %v409_v56 = vpack.c.bf16 %v379_v55, %v379_v55  ;;  %v4289_v62 = vld [vmem:[%s5309_s24 + $0x5d0] ss:$8 sps:$4 sm:$0xff]   ;;  %v4290_v63 = vld [vmem:[%s5309_s24 + $0xe4] ss:$8 sps:$4 sm:$0xff]   ;;  %v4294_v1 = vld [vmem:[%s5309_s24 + $0xe0] ss:$8 sps:$4 sm:$0xff]  }
  0xb5   : > { %2953 = vmatprep.subr.bf16.mxu0 %v4238_v22  ;;  %v4292_v0 = vld [vmem:[%s5309_s24 + $0x5e4] ss:$8 sps:$4 sm:$0xff]   ;;  %v4295_v2 = vld [vmem:[%s5309_s24 + $0x5e0] ss:$8 sps:$4 sm:$0xff]   ;;  %v4296_v3 = vld [vmem:[%s5309_s24 + $0xf4] ss:$8 sps:$4 sm:$0xff]  }
  0xb6   : > { %2770 = vmatprep.mubr.bf16.mxu1 %v399_v54  ;;  %2975 = vmatprep.mubr.bf16.mxu0 %v409_v56  ;;  %v4298_v4 = vld [vmem:[%s5309_s24 + $0x5f4] ss:$8 sps:$4 sm:$0xff]   ;;  %v4300_v5 = vld [vmem:[%s5309_s24 + $0xf0] ss:$8 sps:$4 sm:$0xff]   ;;  %v4305_v7 = vld [vmem:[%s5309_s24 + $0x104] ss:$8 sps:$4 sm:$0xff]  }
  0xb7   : > { %2749 = vmatpush1.bf16.msra.mxu1 %v4240_v23  ;;  %v4301_v6 = vld [vmem:[%s5309_s24 + $0x5f0] ss:$8 sps:$4 sm:$0xff]   ;;  %v4309_v8 = vld [vmem:[%s5309_s24 + $0x604] ss:$8 sps:$4 sm:$0xff]   ;;  %v4303_v11 = vld [vmem:[%s5309_s24 + $0x100] ss:$8 sps:$4 sm:$0xff]  }
  0xb8   : > { %2954 = vmatpush1.bf16.msra.mxu0 %v4241_v24  ;;  %2750 = vmatprep.subr.bf16.mxu1 %v4242_v25  ;;  %v4307_v12 = vld [vmem:[%s5309_s24 + $0x600] ss:$8 sps:$4 sm:$0xff]   ;;  %v4312_v13 = vld [vmem:[%s5309_s24 + $0x114] ss:$8 sps:$4 sm:$0xff]   ;;  %v4310_v15 = vld [vmem:[%s5309_s24 + $0x110] ss:$8 sps:$4 sm:$0xff]  }
  0xb9   : > { %2955 = vmatprep.subr.bf16.mxu0 %v4244_v26  ;;  %v4315_v14 = vld [vmem:[%s5309_s24 + $0x614] ss:$8 sps:$4 sm:$0xff]   ;;  %v4313_v16 = vld [vmem:[%s5309_s24 + $0x610] ss:$8 sps:$4 sm:$0xff]   ;;  %v4318_v17 = vld [vmem:[%s5309_s24 + $0x124] ss:$8 sps:$4 sm:$0xff]  }
  0xba   : > { %v4321_v18 = vld [vmem:[%s5309_s24 + $0x624] ss:$8 sps:$4 sm:$0xff]   ;;  %v4316_v19 = vld [vmem:[%s5309_s24 + $0x120] ss:$8 sps:$4 sm:$0xff]   ;;  %v4324_v21 = vld [vmem:[%s5309_s24 + $0x134] ss:$8 sps:$4 sm:$0xff]  }
  0xbb   : > { %2751 = vmatpush1.bf16.msra.mxu1 %v4246_v27  ;;  %v4319_v20 = vld [vmem:[%s5309_s24 + $0x620] ss:$8 sps:$4 sm:$0xff]   ;;  %v4327_v22 = vld [vmem:[%s5309_s24 + $0x634] ss:$8 sps:$4 sm:$0xff]   ;;  %v4322_v23 = vld [vmem:[%s5309_s24 + $0x130] ss:$8 sps:$4 sm:$0xff]  }
  0xbc   : > { %2956 = vmatpush1.bf16.msra.mxu0 %v4247_v28  ;;  %2752 = vmatprep.subr.bf16.mxu1 %v4248_v29  ;;  %v4325_v24 = vld [vmem:[%s5309_s24 + $0x630] ss:$8 sps:$4 sm:$0xff]   ;;  %v4330_v25 = vld [vmem:[%s5309_s24 + $0x144] ss:$8 sps:$4 sm:$0xff]   ;;  %v4328_v27 = vld [vmem:[%s5309_s24 + $0x140] ss:$8 sps:$4 sm:$0xff]  }
  0xbd   : > { %2957 = vmatprep.subr.bf16.mxu0 %v4250_v30  ;;  %v4333_v26 = vld [vmem:[%s5309_s24 + $0x644] ss:$8 sps:$4 sm:$0xff]   ;;  %v4331_v28 = vld [vmem:[%s5309_s24 + $0x640] ss:$8 sps:$4 sm:$0xff]   ;;  %v4336_v29 = vld [vmem:[%s5309_s24 + $0x154] ss:$8 sps:$4 sm:$0xff]  }
  0xbe   : > { %v4339_v30 = vld [vmem:[%s5309_s24 + $0x654] ss:$8 sps:$4 sm:$0xff]   ;;  %v4354_v47 = vld [vmem:[%s5309_s24 + $0x184] ss:$8 sps:$4 sm:$0xff]   ;;  %v4352_v49 = vld [vmem:[%s5309_s24 + $0x180] ss:$8 sps:$4 sm:$0xff]  }
  0xbf   : > { %2753 = vmatpush1.bf16.msra.mxu1 %v4252_v31  ;;  %v4334_v31 = vld [vmem:[%s5309_s24 + $0x150] ss:$8 sps:$4 sm:$0xff]   ;;  %v4360_v51 = vld [vmem:[%s5309_s24 + $0x194] ss:$8 sps:$4 sm:$0xff]   ;;  %v4366_v55 = vld [vmem:[%s5309_s24 + $0x1a4] ss:$8 sps:$4 sm:$0xff]  }
  0xc0   : > { %2958 = vmatpush1.bf16.msra.mxu0 %v4253_v32  ;;  %2754 = vmatprep.subr.bf16.mxu1 %v4254_v33  ;;  %v4337_v32 = vld [vmem:[%s5309_s24 + $0x650] ss:$8 sps:$4 sm:$0xff]   ;;  %v4342_v33 = vld [vmem:[%s5309_s24 + $0x164] ss:$8 sps:$4 sm:$0xff]  }
  0xc1   : > { %2959 = vmatprep.subr.bf16.mxu0 %v4256_v34  ;;  %v4345_v34 = vld [vmem:[%s5309_s24 + $0x664] ss:$8 sps:$4 sm:$0xff]   ;;  %v4361_v54 = vld [vmem:[%s5309_s24 + $0x690] ss:$8 sps:$4 sm:$0xff]  }
  0xc2   : > { %v4369_v56 = vld [vmem:[%s5309_s24 + $0x6a4] ss:$8 sps:$4 sm:$0xff]  }
  0xc3   : > { %2755 = vmatpush1.bf16.msra.mxu1 %v4258_v35  ;;  %v5422_v35 = vld [vmem:[#allocation2 + $0x8] sm:$0xff] }
  0xc4   : > { %2960 = vmatpush1.bf16.msra.mxu0 %v4259_v36  ;;  %2756 = vmatprep.subr.bf16.mxu1 %v4260_v37  ;;  %v4340_v36 = vld [vmem:[%s5309_s24 + $0x160] ss:$8 sps:$4 sm:$0xff]  }
  0xc5   : > { %2961 = vmatprep.subr.bf16.mxu0 %v4262_v38  ;;  %v4343_v37 = vld [vmem:[%s5309_s24 + $0x660] ss:$8 sps:$4 sm:$0xff]   ;;  %v375_v38 = vcombine.high %v5422_v35, %v5422_v35 }
  0xc7   : > { %2757 = vmatpush1.bf16.msra.mxu1 %v4264_v39  ;;  %v5428_v39 = vld [vmem:[#allocation2 + $0x30] sm:$0xff] }
  0xc8   : > { %2962 = vmatpush1.bf16.msra.mxu0 %v4265_v40  ;;  %2758 = vmatprep.subr.bf16.mxu1 %v4266_v41  ;;  %v4348_v40 = vld [vmem:[%s5309_s24 + $0x174] ss:$8 sps:$4 sm:$0xff]   ;;  %v380_v41 = vcombine.high %v5428_v39, %v5428_v39 }
  0xc9   : > { %2963 = vmatprep.subr.bf16.mxu0 %v4268_v42  ;;  %v4351_v42 = vld [vmem:[%s5309_s24 + $0x674] ss:$8 sps:$4 sm:$0xff]  }
  0xcb   : > { %2759 = vmatpush1.bf16.msra.mxu1 %v4270_v43  ;;  %v401_v43 = vpack.c.bf16 %v375_v38, %v375_v38  ;;  %v4423_v38 = vld [vmem:[%s5309_s24 + $0x730] ss:$8 sps:$4 sm:$0xff]  }
  0xcc   : > { %2964 = vmatpush1.bf16.msra.mxu0 %v4271_v44  ;;  %2760 = vmatprep.subr.bf16.mxu1 %v4272_v45  ;;  %v411_v44 = vpack.c.bf16 %v380_v41, %v380_v41  ;;  %v4346_v45 = vld [vmem:[%s5309_s24 + $0x170] ss:$8 sps:$4 sm:$0xff]   ;;  %v4426_v41 = vld [vmem:[%s5309_s24 + $0x240] ss:$8 sps:$4 sm:$0xff]  }
  0xcd   : > { %2965 = vmatprep.subr.bf16.mxu0 %v4274_v46  ;;  %v4349_v46 = vld [vmem:[%s5309_s24 + $0x670] ss:$8 sps:$4 sm:$0xff]  }
  0xcf   : > { %2761 = vmatpush1.bf16.msra.mxu1 %v4276_v48  ;;  %v4357_v48 = vld [vmem:[%s5309_s24 + $0x684] ss:$8 sps:$4 sm:$0xff]  }
  0xd0   : > { %2966 = vmatpush1.bf16.msra.mxu0 %v4277_v50  ;;  %2762 = vmatprep.subr.bf16.mxu1 %v4278_v52  ;;  %v4355_v50 = vld [vmem:[%s5309_s24 + $0x680] ss:$8 sps:$4 sm:$0xff]   ;;  %v4363_v52 = vld [vmem:[%s5309_s24 + $0x694] ss:$8 sps:$4 sm:$0xff]  }
  0xd1   : > { %2967 = vmatprep.subr.bf16.mxu0 %v4280_v53  ;;  %v4358_v53 = vld [vmem:[%s5309_s24 + $0x190] ss:$8 sps:$4 sm:$0xff]  }
  0xd3   : > { %2763 = vmatpush1.bf16.msra.mxu1 %v4282_v57  ;;  %v4364_v57 = vld [vmem:[%s5309_s24 + $0x1a0] ss:$8 sps:$4 sm:$0xff]  }
  0xd4   : > { %2968 = vmatpush1.bf16.msra.mxu0 %v4283_v58  ;;  %2764 = vmatprep.subr.bf16.mxu1 %v4284_v59  ;;  %v4367_v58 = vld [vmem:[%s5309_s24 + $0x6a0] ss:$8 sps:$4 sm:$0xff]   ;;  %v4372_v59 = vld [vmem:[%s5309_s24 + $0x1b4] ss:$8 sps:$4 sm:$0xff]  }
  0xd5   : > { %2969 = vmatprep.subr.bf16.mxu0 %v4286_v60  ;;  %v4375_v60 = vld [vmem:[%s5309_s24 + $0x6b4] ss:$8 sps:$4 sm:$0xff]  }
  0xd7   : > { %2765 = vmatpush1.bf16.msra.mxu1 %v4288_v61  ;;  %v4370_v61 = vld [vmem:[%s5309_s24 + $0x1b0] ss:$8 sps:$4 sm:$0xff]  }
  0xd8   : > { %2970 = vmatpush1.bf16.msra.mxu0 %v4289_v62  ;;  %2766 = vmatprep.subr.bf16.mxu1 %v4290_v63  ;;  %v4373_v62 = vld [vmem:[%s5309_s24 + $0x6b0] ss:$8 sps:$4 sm:$0xff]   ;;  %v4378_v63 = vld [vmem:[%s5309_s24 + $0x1c4] ss:$8 sps:$4 sm:$0xff]  }
  0xd9   : > { %2971 = vmatprep.subr.bf16.mxu0 %v4292_v0  ;;  %v4381_v0 = vld [vmem:[%s5309_s24 + $0x6c4] ss:$8 sps:$4 sm:$0xff]  }
  0xdb   : > { %2767 = vmatpush1.bf16.msra.mxu1 %v4294_v1  ;;  %v4376_v1 = vld [vmem:[%s5309_s24 + $0x1c0] ss:$8 sps:$4 sm:$0xff]  }
  0xdc   : > { %2972 = vmatpush1.bf16.msra.mxu0 %v4295_v2  ;;  %2768 = vmatprep.subr.bf16.mxu1 %v4296_v3  ;;  %v4379_v2 = vld [vmem:[%s5309_s24 + $0x6c0] ss:$8 sps:$4 sm:$0xff]   ;;  %v4384_v3 = vld [vmem:[%s5309_s24 + $0x1d4] ss:$8 sps:$4 sm:$0xff]  }
  0xdd   : > { %2973 = vmatprep.subr.bf16.mxu0 %v4298_v4  ;;  %v4387_v4 = vld [vmem:[%s5309_s24 + $0x6d4] ss:$8 sps:$4 sm:$0xff]  }
  0xdf   : > { %2769 = vmatpush1.bf16.msra.mxu1 %v4300_v5  ;;  %v4382_v5 = vld [vmem:[%s5309_s24 + $0x1d0] ss:$8 sps:$4 sm:$0xff]  }
  0xe0   : > { %2974 = vmatpush1.bf16.msra.mxu0 %v4301_v6  ;;  %2779 = vmatprep.subr.bf16.mxu1 %v4305_v7  ;;  %v4385_v6 = vld [vmem:[%s5309_s24 + $0x6d0] ss:$8 sps:$4 sm:$0xff]   ;;  %v4390_v7 = vld [vmem:[%s5309_s24 + $0x1e4] ss:$8 sps:$4 sm:$0xff]  }
  0xe1   : > { %2984 = vmatprep.subr.bf16.mxu0 %v4309_v8  ;;  %v4393_v8 = vld [vmem:[%s5309_s24 + $0x6e4] ss:$8 sps:$4 sm:$0xff]  }
  0xe2   : > { %2771 = vmatmul.mubr.bf16.vlgmr.msra.gmra.mrb[0].mxu1 %v398_v9  ;;  %v4388_v9 = vld [vmem:[%s5309_s24 + $0x1e0] ss:$8 sps:$4 sm:$0xff]  }
  0xe3   : > { %2976 = vmatmul.mubr.bf16.vlgmr.msra.gmra.mrb[0].mxu0 %v408_v10  ;;  %2780 = vmatpush1.bf16.msra.mxu1 %v4303_v11  ;;  %v4391_v10 = vld [vmem:[%s5309_s24 + $0x6e0] ss:$8 sps:$4 sm:$0xff]   ;;  %v4396_v11 = vld [vmem:[%s5309_s24 + $0x1f4] ss:$8 sps:$4 sm:$0xff]  }
  0xe4   : > { %2985 = vmatpush1.bf16.msra.mxu0 %v4307_v12  ;;  %2781 = vmatprep.subr.bf16.mxu1 %v4312_v13  ;;  %v4399_v12 = vld [vmem:[%s5309_s24 + $0x6f4] ss:$8 sps:$4 sm:$0xff]   ;;  %v4394_v13 = vld [vmem:[%s5309_s24 + $0x1f0] ss:$8 sps:$4 sm:$0xff]  }
  0xe5   : > { %2986 = vmatprep.subr.bf16.mxu0 %v4315_v14  ;;  %2811 = vmatprep.mubr.bf16.mxu1 %v401_v43  ;;  %v4397_v14 = vld [vmem:[%s5309_s24 + $0x6f0] ss:$8 sps:$4 sm:$0xff]   ;;  %v4434_v43 = vld [vmem:[%s5309_s24 + $0x254] ss:$8 sps:$4 sm:$0xff]  }
  0xe6   : > { %3016 = vmatprep.mubr.bf16.mxu0 %v411_v44  ;;  %v4437_v44 = vld [vmem:[%s5309_s24 + $0x754] ss:$8 sps:$4 sm:$0xff]  }
  0xe7   : > { %2782 = vmatpush1.bf16.msra.mxu1 %v4310_v15  ;;  %v4403_v15 = vld [vmem:[%s5309_s24 + $0x204] ss:$8 sps:$4 sm:$0xff]  }
  0xe8   : > { %2987 = vmatpush1.bf16.msra.mxu0 %v4313_v16  ;;  %2783 = vmatprep.subr.bf16.mxu1 %v4318_v17  ;;  %v4407_v16 = vld [vmem:[%s5309_s24 + $0x704] ss:$8 sps:$4 sm:$0xff]   ;;  %v400_v17 = vpack.c.bf16 %v5422_v35, %v5422_v35  ;;  %v4422_v35 = vld [vmem:[%s5309_s24 + $0x234] ss:$8 sps:$4 sm:$0xff]  }
  0xe9   : > { %2988 = vmatprep.subr.bf16.mxu0 %v4321_v18  ;;  %v4401_v18 = vld [vmem:[%s5309_s24 + $0x200] ss:$8 sps:$4 sm:$0xff]  }
  0xeb   : > { %2784 = vmatpush1.bf16.msra.mxu1 %v4316_v19  ;;  %v410_v19 = vpack.c.bf16 %v5428_v39, %v5428_v39  ;;  %v4428_v39 = vld [vmem:[%s5309_s24 + $0x244] ss:$8 sps:$4 sm:$0xff]  }
  0xec   : > { %2989 = vmatpush1.bf16.msra.mxu0 %v4319_v20  ;;  %2785 = vmatprep.subr.bf16.mxu1 %v4324_v21  ;;  %v4405_v20 = vld [vmem:[%s5309_s24 + $0x700] ss:$8 sps:$4 sm:$0xff]   ;;  %v4410_v21 = vld [vmem:[%s5309_s24 + $0x214] ss:$8 sps:$4 sm:$0xff]  }
  0xed   : > { %2990 = vmatprep.subr.bf16.mxu0 %v4327_v22  ;;  %v4413_v22 = vld [vmem:[%s5309_s24 + $0x714] ss:$8 sps:$4 sm:$0xff]  }
  0xef   : > { %2786 = vmatpush1.bf16.msra.mxu1 %v4322_v23  ;;  %v5478_v23 = vld [vmem:[#allocation2 + $0x10] sm:$0xff] }
  0xf0   : > { %2991 = vmatpush1.bf16.msra.mxu0 %v4325_v24  ;;  %2787 = vmatprep.subr.bf16.mxu1 %v4330_v25  ;;  %v376_v24 = vcombine.high %v5478_v23, %v5478_v23  ;;  %v5482_v25 = vld [vmem:[#allocation2 + $0x38] sm:$0xff] }
  0xf1   : > { %2992 = vmatprep.subr.bf16.mxu0 %v4333_v26  ;;  %v4408_v26 = vld [vmem:[%s5309_s24 + $0x210] ss:$8 sps:$4 sm:$0xff]  }
  0xf3   : > { %2788 = vmatpush1.bf16.msra.mxu1 %v4328_v27  ;;  %v4411_v27 = vld [vmem:[%s5309_s24 + $0x710] ss:$8 sps:$4 sm:$0xff]  }
  0xf4   : > { %2993 = vmatpush1.bf16.msra.mxu0 %v4331_v28  ;;  %2789 = vmatprep.subr.bf16.mxu1 %v4336_v29  ;;  %v403_v28 = vpack.c.bf16 %v376_v24, %v376_v24  ;;  %v381_v29 = vcombine.high %v5482_v25, %v5482_v25  ;;  %v5544_v24 = vld [vmem:[#allocation2 + $0x18] sm:$0xff] }
  0xf5   : > { %2994 = vmatprep.subr.bf16.mxu0 %v4339_v30  ;;  %v4416_v30 = vld [vmem:[%s5309_s24 + $0x224] ss:$8 sps:$4 sm:$0xff]  }
  0xf7   : > { %2790 = vmatpush1.bf16.msra.mxu1 %v4334_v31  ;;  %v4419_v31 = vld [vmem:[%s5309_s24 + $0x724] ss:$8 sps:$4 sm:$0xff]  }
  0xf8   : > { %2995 = vmatpush1.bf16.msra.mxu0 %v4337_v32  ;;  %2791 = vmatprep.subr.bf16.mxu1 %v4342_v33  ;;  %v413_v32 = vpack.c.bf16 %v381_v29, %v381_v29  ;;  %v4414_v33 = vld [vmem:[%s5309_s24 + $0x220] ss:$8 sps:$4 sm:$0xff]   ;;  %v377_v29 = vcombine.high %v5544_v24, %v5544_v24 }
  0xf9   : > { %2996 = vmatprep.subr.bf16.mxu0 %v4345_v34  ;;  %v4417_v34 = vld [vmem:[%s5309_s24 + $0x720] ss:$8 sps:$4 sm:$0xff]  }
  0xfb   : > { %2792 = vmatpush1.bf16.msra.mxu1 %v4340_v36  ;;  %v4425_v36 = vld [vmem:[%s5309_s24 + $0x734] ss:$8 sps:$4 sm:$0xff]  }
  0xfc   : > { %2997 = vmatpush1.bf16.msra.mxu0 %v4343_v37  ;;  %2793 = vmatprep.subr.bf16.mxu1 %v4348_v40  ;;  %v4420_v37 = vld [vmem:[%s5309_s24 + $0x230] ss:$8 sps:$4 sm:$0xff]   ;;  %v4431_v40 = vld [vmem:[%s5309_s24 + $0x744] ss:$8 sps:$4 sm:$0xff]  }
  0xfd   : > { %2998 = vmatprep.subr.bf16.mxu0 %v4351_v42  ;;  %v4429_v42 = vld [vmem:[%s5309_s24 + $0x740] ss:$8 sps:$4 sm:$0xff]  }
  0xff   : > { %2794 = vmatpush1.bf16.msra.mxu1 %v4346_v45  ;;  %v4432_v45 = vld [vmem:[%s5309_s24 + $0x250] ss:$8 sps:$4 sm:$0xff]  }
 0x100   : > { %2999 = vmatpush1.bf16.msra.mxu0 %v4349_v46  ;;  %2795 = vmatprep.subr.bf16.mxu1 %v4354_v47  ;;  %v4435_v46 = vld [vmem:[%s5309_s24 + $0x750] ss:$8 sps:$4 sm:$0xff]   ;;  %v4440_v47 = vld [vmem:[%s5309_s24 + $0x264] ss:$8 sps:$4 sm:$0xff]  }
 0x101   : > { %3000 = vmatprep.subr.bf16.mxu0 %v4357_v48  ;;  %v4443_v48 = vld [vmem:[%s5309_s24 + $0x764] ss:$8 sps:$4 sm:$0xff]  }
 0x103   : > { %2796 = vmatpush1.bf16.msra.mxu1 %v4352_v49  ;;  %v4438_v49 = vld [vmem:[%s5309_s24 + $0x260] ss:$8 sps:$4 sm:$0xff]  }
 0x104   : > { %3001 = vmatpush1.bf16.msra.mxu0 %v4355_v50  ;;  %2797 = vmatprep.subr.bf16.mxu1 %v4360_v51  ;;  %v4441_v50 = vld [vmem:[%s5309_s24 + $0x760] ss:$8 sps:$4 sm:$0xff]   ;;  %v4446_v51 = vld [vmem:[%s5309_s24 + $0x274] ss:$8 sps:$4 sm:$0xff]  }
 0x105   : > { %3002 = vmatprep.subr.bf16.mxu0 %v4363_v52  ;;  %v4449_v52 = vld [vmem:[%s5309_s24 + $0x774] ss:$8 sps:$4 sm:$0xff]  }
 0x107   : > { %2798 = vmatpush1.bf16.msra.mxu1 %v4358_v53  ;;  %v4444_v53 = vld [vmem:[%s5309_s24 + $0x270] ss:$8 sps:$4 sm:$0xff]  }
 0x108   : > { %3003 = vmatpush1.bf16.msra.mxu0 %v4361_v54  ;;  %2799 = vmatprep.subr.bf16.mxu1 %v4366_v55  ;;  %v4447_v54 = vld [vmem:[%s5309_s24 + $0x770] ss:$8 sps:$4 sm:$0xff]   ;;  %v4452_v55 = vld [vmem:[%s5309_s24 + $0x284] ss:$8 sps:$4 sm:$0xff]  }
 0x109   : > { %3004 = vmatprep.subr.bf16.mxu0 %v4369_v56  ;;  %v4455_v56 = vld [vmem:[%s5309_s24 + $0x784] ss:$8 sps:$4 sm:$0xff]  }
 0x10b   : > { %2800 = vmatpush1.bf16.msra.mxu1 %v4364_v57  ;;  %v4450_v57 = vld [vmem:[%s5309_s24 + $0x280] ss:$8 sps:$4 sm:$0xff]  }
 0x10c   : > { %3005 = vmatpush1.bf16.msra.mxu0 %v4367_v58  ;;  %2801 = vmatprep.subr.bf16.mxu1 %v4372_v59  ;;  %v4453_v58 = vld [vmem:[%s5309_s24 + $0x780] ss:$8 sps:$4 sm:$0xff]   ;;  %v4458_v59 = vld [vmem:[%s5309_s24 + $0x294] ss:$8 sps:$4 sm:$0xff]  }
 0x10d   : > { %3006 = vmatprep.subr.bf16.mxu0 %v4375_v60  ;;  %v4461_v60 = vld [vmem:[%s5309_s24 + $0x794] ss:$8 sps:$4 sm:$0xff]  }
 0x10f   : > { %2802 = vmatpush1.bf16.msra.mxu1 %v4370_v61  ;;  %v4456_v61 = vld [vmem:[%s5309_s24 + $0x290] ss:$8 sps:$4 sm:$0xff]  }
 0x110   : > { %3007 = vmatpush1.bf16.msra.mxu0 %v4373_v62  ;;  %2803 = vmatprep.subr.bf16.mxu1 %v4378_v63  ;;  %v4459_v62 = vld [vmem:[%s5309_s24 + $0x790] ss:$8 sps:$4 sm:$0xff]   ;;  %v4464_v63 = vld [vmem:[%s5309_s24 + $0x2a4] ss:$8 sps:$4 sm:$0xff]  }
 0x111   : > { %3008 = vmatprep.subr.bf16.mxu0 %v4381_v0  ;;  %v4467_v0 = vld [vmem:[%s5309_s24 + $0x7a4] ss:$8 sps:$4 sm:$0xff]  }
 0x113   : > { %2804 = vmatpush1.bf16.msra.mxu1 %v4376_v1  ;;  %v4462_v1 = vld [vmem:[%s5309_s24 + $0x2a0] ss:$8 sps:$4 sm:$0xff]  }
 0x114   : > { %3009 = vmatpush1.bf16.msra.mxu0 %v4379_v2  ;;  %2805 = vmatprep.subr.bf16.mxu1 %v4384_v3  ;;  %v4465_v2 = vld [vmem:[%s5309_s24 + $0x7a0] ss:$8 sps:$4 sm:$0xff]   ;;  %v4470_v3 = vld [vmem:[%s5309_s24 + $0x2b4] ss:$8 sps:$4 sm:$0xff]  }
 0x115   : > { %3010 = vmatprep.subr.bf16.mxu0 %v4387_v4  ;;  %v4473_v4 = vld [vmem:[%s5309_s24 + $0x7b4] ss:$8 sps:$4 sm:$0xff]  }
 0x117   : > { %2806 = vmatpush1.bf16.msra.mxu1 %v4382_v5  ;;  %v4468_v5 = vld [vmem:[%s5309_s24 + $0x2b0] ss:$8 sps:$4 sm:$0xff]  }
 0x118   : > { %3011 = vmatpush1.bf16.msra.mxu0 %v4385_v6  ;;  %2807 = vmatprep.subr.bf16.mxu1 %v4390_v7  ;;  %v4471_v6 = vld [vmem:[%s5309_s24 + $0x7b0] ss:$8 sps:$4 sm:$0xff]   ;;  %v4476_v7 = vld [vmem:[%s5309_s24 + $0x2c4] ss:$8 sps:$4 sm:$0xff]  }
 0x119   : > { %3012 = vmatprep.subr.bf16.mxu0 %v4393_v8  ;;  %v4479_v8 = vld [vmem:[%s5309_s24 + $0x7c4] ss:$8 sps:$4 sm:$0xff]  }
 0x11b   : > { %2808 = vmatpush1.bf16.msra.mxu1 %v4388_v9  ;;  %v4474_v9 = vld [vmem:[%s5309_s24 + $0x2c0] ss:$8 sps:$4 sm:$0xff]  }
 0x11c   : > { %3013 = vmatpush1.bf16.msra.mxu0 %v4391_v10  ;;  %2809 = vmatprep.subr.bf16.mxu1 %v4396_v11  ;;  %v4477_v10 = vld [vmem:[%s5309_s24 + $0x7c0] ss:$8 sps:$4 sm:$0xff]   ;;  %v4482_v11 = vld [vmem:[%s5309_s24 + $0x2d4] ss:$8 sps:$4 sm:$0xff]  }
 0x11d   : > { %3014 = vmatprep.subr.bf16.mxu0 %v4399_v12  ;;  %v4485_v12 = vld [vmem:[%s5309_s24 + $0x7d4] ss:$8 sps:$4 sm:$0xff]  }
 0x11f   : > { %2810 = vmatpush1.bf16.msra.mxu1 %v4394_v13  ;;  %v4480_v13 = vld [vmem:[%s5309_s24 + $0x2d0] ss:$8 sps:$4 sm:$0xff]  }
 0x120   : > { %3015 = vmatpush1.bf16.msra.mxu0 %v4397_v14  ;;  %2820 = vmatprep.subr.bf16.mxu1 %v4403_v15  ;;  %v4483_v14 = vld [vmem:[%s5309_s24 + $0x7d0] ss:$8 sps:$4 sm:$0xff]   ;;  %v4488_v15 = vld [vmem:[%s5309_s24 + $0x2e4] ss:$8 sps:$4 sm:$0xff]  }
 0x121   : > { %3025 = vmatprep.subr.bf16.mxu0 %v4407_v16  ;;  %v4491_v16 = vld [vmem:[%s5309_s24 + $0x7e4] ss:$8 sps:$4 sm:$0xff]  }
 0x122   : > { %2812 = vmatmul.mubr.bf16.vlgmr.msra.gmra.mrb[0].mxu1 %v400_v17  ;;  %v4486_v17 = vld [vmem:[%s5309_s24 + $0x2e0] ss:$8 sps:$4 sm:$0xff]  }
 0x123   : > { %3017 = vmatmul.mubr.bf16.vlgmr.msra.gmra.mrb[0].mxu0 %v410_v19  ;;  %2821 = vmatpush1.bf16.msra.mxu1 %v4401_v18  ;;  %v4489_v18 = vld [vmem:[%s5309_s24 + $0x7e0] ss:$8 sps:$4 sm:$0xff]   ;;  %v4494_v19 = vld [vmem:[%s5309_s24 + $0x2f4] ss:$8 sps:$4 sm:$0xff]  }
 0x124   : > { %3026 = vmatpush1.bf16.msra.mxu0 %v4405_v20  ;;  %2822 = vmatprep.subr.bf16.mxu1 %v4410_v21  ;;  %v4497_v20 = vld [vmem:[%s5309_s24 + $0x7f4] ss:$8 sps:$4 sm:$0xff]   ;;  %v4492_v21 = vld [vmem:[%s5309_s24 + $0x2f0] ss:$8 sps:$4 sm:$0xff]  }
 0x125   : > { %3027 = vmatprep.subr.bf16.mxu0 %v4413_v22  ;;  %2852 = vmatprep.mubr.bf16.mxu1 %v403_v28  ;;  %v4495_v22 = vld [vmem:[%s5309_s24 + $0x7f0] ss:$8 sps:$4 sm:$0xff]   ;;  %v4505_v28 = vld [vmem:[%s5309_s24 + $0x804] ss:$8 sps:$4 sm:$0xff]  }
 0x126   : > { %3057 = vmatprep.mubr.bf16.mxu0 %v413_v32  ;;  %v4499_v32 = vld [vmem:[%s5309_s24 + $0x300] ss:$8 sps:$4 sm:$0xff]  }
 0x127   : > { %2823 = vmatpush1.bf16.msra.mxu1 %v4408_v26  ;;  %v5546_v26 = vld [vmem:[#allocation2 + $0x40] sm:$0xff] }
 0x128   : > { %3028 = vmatpush1.bf16.msra.mxu0 %v4411_v27  ;;  %2824 = vmatprep.subr.bf16.mxu1 %v4416_v30  ;;  %v4501_v27 = vld [vmem:[%s5309_s24 + $0x304] ss:$8 sps:$4 sm:$0xff]   ;;  %v382_v30 = vcombine.high %v5546_v26, %v5546_v26 }
 0x129   : > { %3029 = vmatprep.subr.bf16.mxu0 %v4419_v31  ;;  %v402_v31 = vpack.c.bf16 %v5478_v23, %v5478_v23  ;;  %v4506_v23 = vld [vmem:[%s5309_s24 + $0x310] ss:$8 sps:$4 sm:$0xff]  }
 0x12b   : > { %2825 = vmatpush1.bf16.msra.mxu1 %v4414_v33  ;;  %v412_v33 = vpack.c.bf16 %v5482_v25, %v5482_v25  ;;  %v4514_v25 = vld [vmem:[%s5309_s24 + $0x324] ss:$8 sps:$4 sm:$0xff]  }
 0x12c   : > { %3030 = vmatpush1.bf16.msra.mxu0 %v4417_v34  ;;  %2826 = vmatprep.subr.bf16.mxu1 %v4422_v35  ;;  %v4503_v34 = vld [vmem:[%s5309_s24 + $0x800] ss:$8 sps:$4 sm:$0xff]   ;;  %v4508_v35 = vld [vmem:[%s5309_s24 + $0x314] ss:$8 sps:$4 sm:$0xff]  }
 0x12d   : > { %3031 = vmatprep.subr.bf16.mxu0 %v4425_v36  ;;  %v4511_v36 = vld [vmem:[%s5309_s24 + $0x814] ss:$8 sps:$4 sm:$0xff]  }
 0x12f   : > { %2827 = vmatpush1.bf16.msra.mxu1 %v4420_v37  ;;  %v405_v37 = vpack.c.bf16 %v377_v29, %v377_v29  ;;  %v4584_v29 = vld [vmem:[%s5309_s24 + $0x3e0] ss:$8 sps:$4 sm:$0xff]  }
 0x130   : > { %3032 = vmatpush1.bf16.msra.mxu0 %v4423_v38  ;;  %2828 = vmatprep.subr.bf16.mxu1 %v4428_v39  ;;  %v415_v38 = vpack.c.bf16 %v382_v30, %v382_v30  ;;  %v4509_v39 = vld [vmem:[%s5309_s24 + $0x810] ss:$8 sps:$4 sm:$0xff]   ;;  %v4587_v30 = vld [vmem:[%s5309_s24 + $0x8e0] ss:$8 sps:$4 sm:$0xff]  }
 0x131   : > { %3033 = vmatprep.subr.bf16.mxu0 %v4431_v40  ;;  %v4517_v40 = vld [vmem:[%s5309_s24 + $0x824] ss:$8 sps:$4 sm:$0xff]  }
 0x133   : > { %2829 = vmatpush1.bf16.msra.mxu1 %v4426_v41  ;;  %v4512_v41 = vld [vmem:[%s5309_s24 + $0x320] ss:$8 sps:$4 sm:$0xff]  }
 0x134   : > { %3034 = vmatpush1.bf16.msra.mxu0 %v4429_v42  ;;  %2830 = vmatprep.subr.bf16.mxu1 %v4434_v43  ;;  %v4515_v42 = vld [vmem:[%s5309_s24 + $0x820] ss:$8 sps:$4 sm:$0xff]   ;;  %v4520_v43 = vld [vmem:[%s5309_s24 + $0x334] ss:$8 sps:$4 sm:$0xff]  }
 0x135   : > { %3035 = vmatprep.subr.bf16.mxu0 %v4437_v44  ;;  %v4523_v44 = vld [vmem:[%s5309_s24 + $0x834] ss:$8 sps:$4 sm:$0xff]  }
 0x137   : > { %2831 = vmatpush1.bf16.msra.mxu1 %v4432_v45  ;;  %v4518_v45 = vld [vmem:[%s5309_s24 + $0x330] ss:$8 sps:$4 sm:$0xff]  }
 0x138   : > { %3036 = vmatpush1.bf16.msra.mxu0 %v4435_v46  ;;  %2832 = vmatprep.subr.bf16.mxu1 %v4440_v47  ;;  %v4521_v46 = vld [vmem:[%s5309_s24 + $0x830] ss:$8 sps:$4 sm:$0xff]   ;;  %v4526_v47 = vld [vmem:[%s5309_s24 + $0x344] ss:$8 sps:$4 sm:$0xff]  }
 0x139   : > { %3037 = vmatprep.subr.bf16.mxu0 %v4443_v48  ;;  %v4529_v48 = vld [vmem:[%s5309_s24 + $0x844] ss:$8 sps:$4 sm:$0xff]  }
 0x13b   : > { %2833 = vmatpush1.bf16.msra.mxu1 %v4438_v49  ;;  %v4524_v49 = vld [vmem:[%s5309_s24 + $0x340] ss:$8 sps:$4 sm:$0xff]  }
 0x13c   : > { %3038 = vmatpush1.bf16.msra.mxu0 %v4441_v50  ;;  %2834 = vmatprep.subr.bf16.mxu1 %v4446_v51  ;;  %v4527_v50 = vld [vmem:[%s5309_s24 + $0x840] ss:$8 sps:$4 sm:$0xff]   ;;  %v4532_v51 = vld [vmem:[%s5309_s24 + $0x354] ss:$8 sps:$4 sm:$0xff]  }
 0x13d   : > { %3039 = vmatprep.subr.bf16.mxu0 %v4449_v52  ;;  %v4535_v52 = vld [vmem:[%s5309_s24 + $0x854] ss:$8 sps:$4 sm:$0xff]  }
 0x13f   : > { %2835 = vmatpush1.bf16.msra.mxu1 %v4444_v53  ;;  %v4530_v53 = vld [vmem:[%s5309_s24 + $0x350] ss:$8 sps:$4 sm:$0xff]  }
 0x140   : > { %3040 = vmatpush1.bf16.msra.mxu0 %v4447_v54  ;;  %2836 = vmatprep.subr.bf16.mxu1 %v4452_v55  ;;  %v4533_v54 = vld [vmem:[%s5309_s24 + $0x850] ss:$8 sps:$4 sm:$0xff]   ;;  %v4538_v55 = vld [vmem:[%s5309_s24 + $0x364] ss:$8 sps:$4 sm:$0xff]  }
 0x141   : > { %3041 = vmatprep.subr.bf16.mxu0 %v4455_v56  ;;  %v4541_v56 = vld [vmem:[%s5309_s24 + $0x864] ss:$8 sps:$4 sm:$0xff]  }
 0x143   : > { %2837 = vmatpush1.bf16.msra.mxu1 %v4450_v57  ;;  %v4536_v57 = vld [vmem:[%s5309_s24 + $0x360] ss:$8 sps:$4 sm:$0xff]  }
 0x144   : > { %3042 = vmatpush1.bf16.msra.mxu0 %v4453_v58  ;;  %2838 = vmatprep.subr.bf16.mxu1 %v4458_v59  ;;  %v4539_v58 = vld [vmem:[%s5309_s24 + $0x860] ss:$8 sps:$4 sm:$0xff]   ;;  %v4544_v59 = vld [vmem:[%s5309_s24 + $0x374] ss:$8 sps:$4 sm:$0xff]  }
 0x145   : > { %3043 = vmatprep.subr.bf16.mxu0 %v4461_v60  ;;  %v4547_v60 = vld [vmem:[%s5309_s24 + $0x874] ss:$8 sps:$4 sm:$0xff]  }
 0x147   : > { %2839 = vmatpush1.bf16.msra.mxu1 %v4456_v61  ;;  %v4542_v61 = vld [vmem:[%s5309_s24 + $0x370] ss:$8 sps:$4 sm:$0xff]  }
 0x148   : > { %3044 = vmatpush1.bf16.msra.mxu0 %v4459_v62  ;;  %2840 = vmatprep.subr.bf16.mxu1 %v4464_v63  ;;  %v4545_v62 = vld [vmem:[%s5309_s24 + $0x870] ss:$8 sps:$4 sm:$0xff]   ;;  %v4550_v63 = vld [vmem:[%s5309_s24 + $0x384] ss:$8 sps:$4 sm:$0xff]  }
 0x149   : > { %3045 = vmatprep.subr.bf16.mxu0 %v4467_v0  ;;  %v4553_v0 = vld [vmem:[%s5309_s24 + $0x884] ss:$8 sps:$4 sm:$0xff]  }
 0x14b   : > { %2841 = vmatpush1.bf16.msra.mxu1 %v4462_v1  ;;  %v4548_v1 = vld [vmem:[%s5309_s24 + $0x380] ss:$8 sps:$4 sm:$0xff]  }
 0x14c   : > { %3046 = vmatpush1.bf16.msra.mxu0 %v4465_v2  ;;  %2842 = vmatprep.subr.bf16.mxu1 %v4470_v3  ;;  %v4551_v2 = vld [vmem:[%s5309_s24 + $0x880] ss:$8 sps:$4 sm:$0xff]   ;;  %v4556_v3 = vld [vmem:[%s5309_s24 + $0x394] ss:$8 sps:$4 sm:$0xff]  }
 0x14d   : > { %3047 = vmatprep.subr.bf16.mxu0 %v4473_v4  ;;  %v4559_v4 = vld [vmem:[%s5309_s24 + $0x894] ss:$8 sps:$4 sm:$0xff]  }
 0x14f   : > { %2843 = vmatpush1.bf16.msra.mxu1 %v4468_v5  ;;  %v4554_v5 = vld [vmem:[%s5309_s24 + $0x390] ss:$8 sps:$4 sm:$0xff]  }
 0x150   : > { %3048 = vmatpush1.bf16.msra.mxu0 %v4471_v6  ;;  %2844 = vmatprep.subr.bf16.mxu1 %v4476_v7  ;;  %v4557_v6 = vld [vmem:[%s5309_s24 + $0x890] ss:$8 sps:$4 sm:$0xff]   ;;  %v4562_v7 = vld [vmem:[%s5309_s24 + $0x3a4] ss:$8 sps:$4 sm:$0xff]  }
 0x151   : > { %3049 = vmatprep.subr.bf16.mxu0 %v4479_v8  ;;  %v4565_v8 = vld [vmem:[%s5309_s24 + $0x8a4] ss:$8 sps:$4 sm:$0xff]  }
 0x153   : > { %2845 = vmatpush1.bf16.msra.mxu1 %v4474_v9  ;;  %v4560_v9 = vld [vmem:[%s5309_s24 + $0x3a0] ss:$8 sps:$4 sm:$0xff]  }
 0x154   : > { %3050 = vmatpush1.bf16.msra.mxu0 %v4477_v10  ;;  %2846 = vmatprep.subr.bf16.mxu1 %v4482_v11  ;;  %v4563_v10 = vld [vmem:[%s5309_s24 + $0x8a0] ss:$8 sps:$4 sm:$0xff]   ;;  %v4568_v11 = vld [vmem:[%s5309_s24 + $0x3b4] ss:$8 sps:$4 sm:$0xff]  }
 0x155   : > { %3051 = vmatprep.subr.bf16.mxu0 %v4485_v12  ;;  %v4571_v12 = vld [vmem:[%s5309_s24 + $0x8b4] ss:$8 sps:$4 sm:$0xff]  }
 0x157   : > { %2847 = vmatpush1.bf16.msra.mxu1 %v4480_v13  ;;  %v4566_v13 = vld [vmem:[%s5309_s24 + $0x3b0] ss:$8 sps:$4 sm:$0xff]  }
 0x158   : > { %3052 = vmatpush1.bf16.msra.mxu0 %v4483_v14  ;;  %2848 = vmatprep.subr.bf16.mxu1 %v4488_v15  ;;  %v4569_v14 = vld [vmem:[%s5309_s24 + $0x8b0] ss:$8 sps:$4 sm:$0xff]   ;;  %v4574_v15 = vld [vmem:[%s5309_s24 + $0x3c4] ss:$8 sps:$4 sm:$0xff]  }
 0x159   : > { %3053 = vmatprep.subr.bf16.mxu0 %v4491_v16  ;;  %v4577_v16 = vld [vmem:[%s5309_s24 + $0x8c4] ss:$8 sps:$4 sm:$0xff]  }
 0x15b   : > { %2849 = vmatpush1.bf16.msra.mxu1 %v4486_v17  ;;  %v4572_v17 = vld [vmem:[%s5309_s24 + $0x3c0] ss:$8 sps:$4 sm:$0xff]  }
 0x15c   : > { %3054 = vmatpush1.bf16.msra.mxu0 %v4489_v18  ;;  %2850 = vmatprep.subr.bf16.mxu1 %v4494_v19  ;;  %v4575_v18 = vld [vmem:[%s5309_s24 + $0x8c0] ss:$8 sps:$4 sm:$0xff]   ;;  %v4580_v19 = vld [vmem:[%s5309_s24 + $0x3d4] ss:$8 sps:$4 sm:$0xff]  }
 0x15d   : > { %3055 = vmatprep.subr.bf16.mxu0 %v4497_v20  ;;  %v4583_v20 = vld [vmem:[%s5309_s24 + $0x8d4] ss:$8 sps:$4 sm:$0xff]  }
 0x15f   : > { %2851 = vmatpush1.bf16.msra.mxu1 %v4492_v21  ;;  %v4578_v21 = vld [vmem:[%s5309_s24 + $0x3d0] ss:$8 sps:$4 sm:$0xff]  }
 0x160   : > { %3056 = vmatpush1.bf16.msra.mxu0 %v4495_v22  ;;  %2861 = vmatprep.subr.bf16.mxu1 %v4501_v27  ;;  %v4581_v22 = vld [vmem:[%s5309_s24 + $0x8d0] ss:$8 sps:$4 sm:$0xff]   ;;  %v4586_v27 = vld [vmem:[%s5309_s24 + $0x3e4] ss:$8 sps:$4 sm:$0xff]  }
 0x161   : > { %3066 = vmatprep.subr.bf16.mxu0 %v4505_v28  ;;  %v4589_v28 = vld [vmem:[%s5309_s24 + $0x8e4] ss:$8 sps:$4 sm:$0xff]  }
 0x162   : > { %2853 = vmatmul.mubr.bf16.vlgmr.msra.gmra.mrb[0].mxu1 %v402_v31  ;;  %v4592_v31 = vld [vmem:[%s5309_s24 + $0x3f4] ss:$8 sps:$4 sm:$0xff]  }
 0x163   : > { %3058 = vmatmul.mubr.bf16.vlgmr.msra.gmra.mrb[0].mxu0 %v412_v33  ;;  %2862 = vmatpush1.bf16.msra.mxu1 %v4499_v32  ;;  %v4595_v32 = vld [vmem:[%s5309_s24 + $0x8f4] ss:$8 sps:$4 sm:$0xff]   ;;  %v5618_v33 = vld [vmem:[#allocation2 + $0x20] sm:$0xff] }
 0x164   : > { %3067 = vmatpush1.bf16.msra.mxu0 %v4503_v34  ;;  %2863 = vmatprep.subr.bf16.mxu1 %v4508_v35  ;;  %v5620_v34 = vld [vmem:[#allocation2 + $0x48] sm:$0xff]  ;;  %v4590_v35 = vld [vmem:[%s5309_s24 + $0x3f0] ss:$8 sps:$4 sm:$0xff]  }
 0x165   : > { %3068 = vmatprep.subr.bf16.mxu0 %v4511_v36  ;;  %2893 = vmatprep.mubr.bf16.mxu1 %v405_v37  ;;  %v4593_v36 = vld [vmem:[%s5309_s24 + $0x8f0] ss:$8 sps:$4 sm:$0xff]   ;;  %v4599_v37 = vld [vmem:[%s5309_s24 + $0x404] ss:$8 sps:$4 sm:$0xff]  }
 0x166   : > { %3098 = vmatprep.mubr.bf16.mxu0 %v415_v38  ;;  %v4603_v38 = vld [vmem:[%s5309_s24 + $0x904] ss:$8 sps:$4 sm:$0xff]  }
 0x167   : > { %2864 = vmatpush1.bf16.msra.mxu1 %v4506_v23  ;;  %v4597_v23 = vld [vmem:[%s5309_s24 + $0x400] ss:$8 sps:$4 sm:$0xff]  }
 0x168   : > { %3069 = vmatpush1.bf16.msra.mxu0 %v4509_v39  ;;  %2865 = vmatprep.subr.bf16.mxu1 %v4514_v25  ;;  %v4601_v39 = vld [vmem:[%s5309_s24 + $0x900] ss:$8 sps:$4 sm:$0xff]   ;;  %v378_v25 = vcombine.high %v5618_v33, %v5618_v33 }
 0x169   : > { %3070 = vmatprep.subr.bf16.mxu0 %v4517_v40  ;;  %v383_v40 = vcombine.high %v5620_v34, %v5620_v34 }
 0x16b   : > { %2866 = vmatpush1.bf16.msra.mxu1 %v4512_v41  ;;  %v404_v41 = vpack.c.bf16 %v5544_v24, %v5544_v24  ;;  %v4604_v24 = vld [vmem:[%s5309_s24 + $0x410] ss:$8 sps:$4 sm:$0xff]  }
 0x16c   : > { %3071 = vmatpush1.bf16.msra.mxu0 %v4515_v42  ;;  %2867 = vmatprep.subr.bf16.mxu1 %v4520_v43  ;;  %v414_v42 = vpack.c.bf16 %v5546_v26, %v5546_v26  ;;  %v4606_v43 = vld [vmem:[%s5309_s24 + $0x414] ss:$8 sps:$4 sm:$0xff]   ;;  %v4607_v26 = vld [vmem:[%s5309_s24 + $0x910] ss:$8 sps:$4 sm:$0xff]  }
 0x16d   : > { %3072 = vmatprep.subr.bf16.mxu0 %v4523_v44  ;;  %v4609_v44 = vld [vmem:[%s5309_s24 + $0x914] ss:$8 sps:$4 sm:$0xff]  }
 0x16f   : > { %2868 = vmatpush1.bf16.msra.mxu1 %v4518_v45  ;;  %v407_v45 = vpack.c.bf16 %v378_v25, %v378_v25  ;;  %v4690_v25 = vld [vmem:[%s5309_s24 + $0x4f4] ss:$8 sps:$4 sm:$0xff]  }
 0x170   : > { %3073 = vmatpush1.bf16.msra.mxu0 %v4521_v46  ;;  %2869 = vmatprep.subr.bf16.mxu1 %v4526_v47  ;;  %v417_v46 = vpack.c.bf16 %v383_v40, %v383_v40  ;;  %v4612_v47 = vld [vmem:[%s5309_s24 + $0x424] ss:$8 sps:$4 sm:$0xff]   ;;  %v4693_v40 = vld [vmem:[%s5309_s24 + $0x9f4] ss:$8 sps:$4 sm:$0xff]  }
 0x171   : > { %3074 = vmatprep.subr.bf16.mxu0 %v4529_v48  ;;  %v4615_v48 = vld [vmem:[%s5309_s24 + $0x924] ss:$8 sps:$4 sm:$0xff]  }
 0x173   : > { %2870 = vmatpush1.bf16.msra.mxu1 %v4524_v49  ;;  %v4610_v49 = vld [vmem:[%s5309_s24 + $0x420] ss:$8 sps:$4 sm:$0xff]  }
 0x174   : > { %3075 = vmatpush1.bf16.msra.mxu0 %v4527_v50  ;;  %2871 = vmatprep.subr.bf16.mxu1 %v4532_v51  ;;  %v4613_v50 = vld [vmem:[%s5309_s24 + $0x920] ss:$8 sps:$4 sm:$0xff]   ;;  %v4618_v51 = vld [vmem:[%s5309_s24 + $0x434] ss:$8 sps:$4 sm:$0xff]  }
 0x175   : > { %3076 = vmatprep.subr.bf16.mxu0 %v4535_v52  ;;  %v4621_v52 = vld [vmem:[%s5309_s24 + $0x934] ss:$8 sps:$4 sm:$0xff]  }
 0x177   : > { %2872 = vmatpush1.bf16.msra.mxu1 %v4530_v53  ;;  %v4616_v53 = vld [vmem:[%s5309_s24 + $0x430] ss:$8 sps:$4 sm:$0xff]  }
 0x178   : > { %3077 = vmatpush1.bf16.msra.mxu0 %v4533_v54  ;;  %2873 = vmatprep.subr.bf16.mxu1 %v4538_v55  ;;  %v4619_v54 = vld [vmem:[%s5309_s24 + $0x930] ss:$8 sps:$4 sm:$0xff]   ;;  %v4624_v55 = vld [vmem:[%s5309_s24 + $0x444] ss:$8 sps:$4 sm:$0xff]  }
 0x179   : > { %3078 = vmatprep.subr.bf16.mxu0 %v4541_v56  ;;  %v4627_v56 = vld [vmem:[%s5309_s24 + $0x944] ss:$8 sps:$4 sm:$0xff]  }
 0x17b   : > { %2874 = vmatpush1.bf16.msra.mxu1 %v4536_v57  ;;  %v4622_v57 = vld [vmem:[%s5309_s24 + $0x440] ss:$8 sps:$4 sm:$0xff]  }
 0x17c   : > { %3079 = vmatpush1.bf16.msra.mxu0 %v4539_v58  ;;  %2875 = vmatprep.subr.bf16.mxu1 %v4544_v59  ;;  %v4625_v58 = vld [vmem:[%s5309_s24 + $0x940] ss:$8 sps:$4 sm:$0xff]   ;;  %v4630_v59 = vld [vmem:[%s5309_s24 + $0x454] ss:$8 sps:$4 sm:$0xff]  }
 0x17d   : > { %3080 = vmatprep.subr.bf16.mxu0 %v4547_v60  ;;  %v4633_v60 = vld [vmem:[%s5309_s24 + $0x954] ss:$8 sps:$4 sm:$0xff]  }
 0x17f   : > { %2876 = vmatpush1.bf16.msra.mxu1 %v4542_v61  ;;  %v4628_v61 = vld [vmem:[%s5309_s24 + $0x450] ss:$8 sps:$4 sm:$0xff]  }
 0x180   : > { %3081 = vmatpush1.bf16.msra.mxu0 %v4545_v62  ;;  %2877 = vmatprep.subr.bf16.mxu1 %v4550_v63  ;;  %v4631_v62 = vld [vmem:[%s5309_s24 + $0x950] ss:$8 sps:$4 sm:$0xff]   ;;  %v4636_v63 = vld [vmem:[%s5309_s24 + $0x464] ss:$8 sps:$4 sm:$0xff]  }
 0x181   : > { %3082 = vmatprep.subr.bf16.mxu0 %v4553_v0  ;;  %v4639_v0 = vld [vmem:[%s5309_s24 + $0x964] ss:$8 sps:$4 sm:$0xff]  }
 0x183   : > { %2878 = vmatpush1.bf16.msra.mxu1 %v4548_v1  ;;  %v4634_v1 = vld [vmem:[%s5309_s24 + $0x460] ss:$8 sps:$4 sm:$0xff]  }
 0x184   : > { %3083 = vmatpush1.bf16.msra.mxu0 %v4551_v2  ;;  %2879 = vmatprep.subr.bf16.mxu1 %v4556_v3  ;;  %v4637_v2 = vld [vmem:[%s5309_s24 + $0x960] ss:$8 sps:$4 sm:$0xff]   ;;  %v4642_v3 = vld [vmem:[%s5309_s24 + $0x474] ss:$8 sps:$4 sm:$0xff]  }
 0x185   : > { %3084 = vmatprep.subr.bf16.mxu0 %v4559_v4  ;;  %v4645_v4 = vld [vmem:[%s5309_s24 + $0x974] ss:$8 sps:$4 sm:$0xff]  }
 0x187   : > { %2880 = vmatpush1.bf16.msra.mxu1 %v4554_v5  ;;  %v4640_v5 = vld [vmem:[%s5309_s24 + $0x470] ss:$8 sps:$4 sm:$0xff]  }
 0x188   : > { %3085 = vmatpush1.bf16.msra.mxu0 %v4557_v6  ;;  %2881 = vmatprep.subr.bf16.mxu1 %v4562_v7  ;;  %v4643_v6 = vld [vmem:[%s5309_s24 + $0x970] ss:$8 sps:$4 sm:$0xff]   ;;  %v4648_v7 = vld [vmem:[%s5309_s24 + $0x484] ss:$8 sps:$4 sm:$0xff]  }
 0x189   : > { %3086 = vmatprep.subr.bf16.mxu0 %v4565_v8  ;;  %v4651_v8 = vld [vmem:[%s5309_s24 + $0x984] ss:$8 sps:$4 sm:$0xff]  }
 0x18b   : > { %2882 = vmatpush1.bf16.msra.mxu1 %v4560_v9  ;;  %v4646_v9 = vld [vmem:[%s5309_s24 + $0x480] ss:$8 sps:$4 sm:$0xff]  }
 0x18c   : > { %3087 = vmatpush1.bf16.msra.mxu0 %v4563_v10  ;;  %2883 = vmatprep.subr.bf16.mxu1 %v4568_v11  ;;  %v4649_v10 = vld [vmem:[%s5309_s24 + $0x980] ss:$8 sps:$4 sm:$0xff]   ;;  %v4654_v11 = vld [vmem:[%s5309_s24 + $0x494] ss:$8 sps:$4 sm:$0xff]  }
 0x18d   : > { %3088 = vmatprep.subr.bf16.mxu0 %v4571_v12  ;;  %v4657_v12 = vld [vmem:[%s5309_s24 + $0x994] ss:$8 sps:$4 sm:$0xff]  }
 0x18f   : > { %2884 = vmatpush1.bf16.msra.mxu1 %v4566_v13  ;;  %v4652_v13 = vld [vmem:[%s5309_s24 + $0x490] ss:$8 sps:$4 sm:$0xff]  }
 0x190   : > { %3089 = vmatpush1.bf16.msra.mxu0 %v4569_v14  ;;  %2885 = vmatprep.subr.bf16.mxu1 %v4574_v15  ;;  %v4655_v14 = vld [vmem:[%s5309_s24 + $0x990] ss:$8 sps:$4 sm:$0xff]   ;;  %v4660_v15 = vld [vmem:[%s5309_s24 + $0x4a4] ss:$8 sps:$4 sm:$0xff]  }
 0x191   : > { %3090 = vmatprep.subr.bf16.mxu0 %v4577_v16  ;;  %v4663_v16 = vld [vmem:[%s5309_s24 + $0x9a4] ss:$8 sps:$4 sm:$0xff]  }
 0x193   : > { %2886 = vmatpush1.bf16.msra.mxu1 %v4572_v17  ;;  %v4658_v17 = vld [vmem:[%s5309_s24 + $0x4a0] ss:$8 sps:$4 sm:$0xff]  }
 0x194   : > { %3091 = vmatpush1.bf16.msra.mxu0 %v4575_v18  ;;  %2887 = vmatprep.subr.bf16.mxu1 %v4580_v19  ;;  %v4661_v18 = vld [vmem:[%s5309_s24 + $0x9a0] ss:$8 sps:$4 sm:$0xff]   ;;  %v4666_v19 = vld [vmem:[%s5309_s24 + $0x4b4] ss:$8 sps:$4 sm:$0xff]  }
 0x195   : > { %3092 = vmatprep.subr.bf16.mxu0 %v4583_v20  ;;  %v4669_v20 = vld [vmem:[%s5309_s24 + $0x9b4] ss:$8 sps:$4 sm:$0xff]  }
 0x197   : > { %2888 = vmatpush1.bf16.msra.mxu1 %v4578_v21  ;;  %v4664_v21 = vld [vmem:[%s5309_s24 + $0x4b0] ss:$8 sps:$4 sm:$0xff]  }
 0x198   : > { %3093 = vmatpush1.bf16.msra.mxu0 %v4581_v22  ;;  %2889 = vmatprep.subr.bf16.mxu1 %v4586_v27  ;;  %v4667_v22 = vld [vmem:[%s5309_s24 + $0x9b0] ss:$8 sps:$4 sm:$0xff]   ;;  %v4672_v27 = vld [vmem:[%s5309_s24 + $0x4c4] ss:$8 sps:$4 sm:$0xff]  }
 0x199   : > { %3094 = vmatprep.subr.bf16.mxu0 %v4589_v28  ;;  %v4675_v28 = vld [vmem:[%s5309_s24 + $0x9c4] ss:$8 sps:$4 sm:$0xff]  }
 0x19b   : > { %2890 = vmatpush1.bf16.msra.mxu1 %v4584_v29  ;;  %v4670_v29 = vld [vmem:[%s5309_s24 + $0x4c0] ss:$8 sps:$4 sm:$0xff]  }
 0x19c   : > { %3095 = vmatpush1.bf16.msra.mxu0 %v4587_v30  ;;  %2891 = vmatprep.subr.bf16.mxu1 %v4592_v31  ;;  %v4673_v30 = vld [vmem:[%s5309_s24 + $0x9c0] ss:$8 sps:$4 sm:$0xff]   ;;  %v4678_v31 = vld [vmem:[%s5309_s24 + $0x4d4] ss:$8 sps:$4 sm:$0xff]  }
 0x19d   : > { %3096 = vmatprep.subr.bf16.mxu0 %v4595_v32  ;;  %v4681_v32 = vld [vmem:[%s5309_s24 + $0x9d4] ss:$8 sps:$4 sm:$0xff]  }
 0x19f   : > { %2892 = vmatpush1.bf16.msra.mxu1 %v4590_v35  ;;  %v4676_v35 = vld [vmem:[%s5309_s24 + $0x4d0] ss:$8 sps:$4 sm:$0xff]  }
 0x1a0   : > { %3097 = vmatpush1.bf16.msra.mxu0 %v4593_v36  ;;  %2902 = vmatprep.subr.bf16.mxu1 %v4599_v37  ;;  %v4679_v36 = vld [vmem:[%s5309_s24 + $0x9d0] ss:$8 sps:$4 sm:$0xff]   ;;  %v4684_v37 = vld [vmem:[%s5309_s24 + $0x4e4] ss:$8 sps:$4 sm:$0xff]  }
 0x1a1   : > { %3107 = vmatprep.subr.bf16.mxu0 %v4603_v38  ;;  %v4687_v38 = vld [vmem:[%s5309_s24 + $0x9e4] ss:$8 sps:$4 sm:$0xff]  }
 0x1a2   : > { %2894 = vmatmul.mubr.bf16.vlgmr.msra.gmra.mrb[0].mxu1 %v404_v41  ;;  %v5694_v41 = vld [vmem:[#allocation2 + $0x50] sm:$0xff] }
 0x1a3   : > { %3099 = vmatmul.mubr.bf16.vlgmr.msra.gmra.mrb[0].mxu0 %v414_v42  ;;  %2903 = vmatpush1.bf16.msra.mxu1 %v4597_v23  ;;  %v4682_v23 = vld [vmem:[%s5309_s24 + $0x4e0] ss:$8 sps:$4 sm:$0xff]   ;;  %v4688_v42 = vld [vmem:[%s5309_s24 + $0x4f0] ss:$8 sps:$4 sm:$0xff]  }
 0x1a4   : > { %3108 = vmatpush1.bf16.msra.mxu0 %v4601_v39  ;;  %2904 = vmatprep.subr.bf16.mxu1 %v4606_v43  ;;  %v4685_v39 = vld [vmem:[%s5309_s24 + $0x9e0] ss:$8 sps:$4 sm:$0xff]   ;;  %v4691_v43 = vld [vmem:[%s5309_s24 + $0x9f0] ss:$8 sps:$4 sm:$0xff]  }
 0x1a5   : > { %3109 = vmatprep.subr.bf16.mxu0 %v4609_v44  ;;  %2934 = vmatprep.mubr.bf16.mxu1 %v407_v45  ;;  %v384_v44 = vcombine.high %v5694_v41, %v5694_v41  ;;  %v4698_v45 = vld [vmem:[%s5309_s24 + $0xa04] ss:$8 sps:$4 sm:$0xff]  }
 0x1a6   : > { %3139 = vmatprep.mubr.bf16.mxu0 %v417_v46  ;;  %v406_v46 = vpack.c.bf16 %v5618_v33, %v5618_v33  ;;  %v4704_v33 = vld [vmem:[%s5309_s24 + $0xa24] ss:$8 sps:$4 sm:$0xff]  }
 0x1a7   : > { %2905 = vmatpush1.bf16.msra.mxu1 %v4604_v24  ;;  %v416_v24 = vpack.c.bf16 %v5620_v34, %v5620_v34  ;;  %v4702_v34 = vld [vmem:[%s5309_s24 + $0xa20] ss:$8 sps:$4 sm:$0xff]  }
 0x1a8   : > { %3110 = vmatpush1.bf16.msra.mxu0 %v4607_v26  ;;  %2906 = vmatprep.subr.bf16.mxu1 %v4612_v47  ;;  %v4696_v26 = vld [vmem:[%s5309_s24 + $0xa00] ss:$8 sps:$4 sm:$0xff]   ;;  %v419_v47 = vpack.c.bf16 %v384_v44, %v384_v44  ;;  %v4774_v44 = vld [vmem:[%s5309_s24 + $0xb94] ss:$8 sps:$4 sm:$0xff]  }
 0x1a9   : > { %3111 = vmatprep.subr.bf16.mxu0 %v4615_v48  ;;  %v4701_v48 = vld [vmem:[%s5309_s24 + $0xa14] ss:$8 sps:$4 sm:$0xff]  }
 0x1ab   : > { %2907 = vmatpush1.bf16.msra.mxu1 %v4610_v49  ;;  %v4699_v49 = vld [vmem:[%s5309_s24 + $0xa10] ss:$8 sps:$4 sm:$0xff]  }
 0x1ac   : > { %3112 = vmatpush1.bf16.msra.mxu0 %v4613_v50  ;;  %2908 = vmatprep.subr.bf16.mxu1 %v4618_v51  ;;  %v4707_v50 = vld [vmem:[%s5309_s24 + $0xa34] ss:$8 sps:$4 sm:$0xff]   ;;  %v4705_v51 = vld [vmem:[%s5309_s24 + $0xa30] ss:$8 sps:$4 sm:$0xff]  }
 0x1ad   : > { %3113 = vmatprep.subr.bf16.mxu0 %v4621_v52  ;;  %v4710_v52 = vld [vmem:[%s5309_s24 + $0xa44] ss:$8 sps:$4 sm:$0xff]  }
 0x1af   : > { %2909 = vmatpush1.bf16.msra.mxu1 %v4616_v53  ;;  %v4708_v53 = vld [vmem:[%s5309_s24 + $0xa40] ss:$8 sps:$4 sm:$0xff]  }
 0x1b0   : > { %3114 = vmatpush1.bf16.msra.mxu0 %v4619_v54  ;;  %2910 = vmatprep.subr.bf16.mxu1 %v4624_v55  ;;  %v4713_v54 = vld [vmem:[%s5309_s24 + $0xa54] ss:$8 sps:$4 sm:$0xff]   ;;  %v4711_v55 = vld [vmem:[%s5309_s24 + $0xa50] ss:$8 sps:$4 sm:$0xff]  }
 0x1b1   : > { %3115 = vmatprep.subr.bf16.mxu0 %v4627_v56  ;;  %v4716_v56 = vld [vmem:[%s5309_s24 + $0xa64] ss:$8 sps:$4 sm:$0xff]  }
 0x1b3   : > { %2911 = vmatpush1.bf16.msra.mxu1 %v4622_v57  ;;  %v4714_v57 = vld [vmem:[%s5309_s24 + $0xa60] ss:$8 sps:$4 sm:$0xff]  }
 0x1b4   : > { %3116 = vmatpush1.bf16.msra.mxu0 %v4625_v58  ;;  %2912 = vmatprep.subr.bf16.mxu1 %v4630_v59  ;;  %v4719_v58 = vld [vmem:[%s5309_s24 + $0xa74] ss:$8 sps:$4 sm:$0xff]   ;;  %v4717_v59 = vld [vmem:[%s5309_s24 + $0xa70] ss:$8 sps:$4 sm:$0xff]  }
 0x1b5   : > { %3117 = vmatprep.subr.bf16.mxu0 %v4633_v60  ;;  %v4722_v60 = vld [vmem:[%s5309_s24 + $0xa84] ss:$8 sps:$4 sm:$0xff]  }
 0x1b7   : > { %2913 = vmatpush1.bf16.msra.mxu1 %v4628_v61  ;;  %v4720_v61 = vld [vmem:[%s5309_s24 + $0xa80] ss:$8 sps:$4 sm:$0xff]  }
 0x1b8   : > { %3118 = vmatpush1.bf16.msra.mxu0 %v4631_v62  ;;  %2914 = vmatprep.subr.bf16.mxu1 %v4636_v63  ;;  %v4725_v62 = vld [vmem:[%s5309_s24 + $0xa94] ss:$8 sps:$4 sm:$0xff]   ;;  %v4723_v63 = vld [vmem:[%s5309_s24 + $0xa90] ss:$8 sps:$4 sm:$0xff]  }
 0x1b9   : > { %3119 = vmatprep.subr.bf16.mxu0 %v4639_v0  ;;  %v4728_v0 = vld [vmem:[%s5309_s24 + $0xaa4] ss:$8 sps:$4 sm:$0xff]  }
 0x1bb   : > { %2915 = vmatpush1.bf16.msra.mxu1 %v4634_v1  ;;  %v4726_v1 = vld [vmem:[%s5309_s24 + $0xaa0] ss:$8 sps:$4 sm:$0xff]  }
 0x1bc   : > { %3120 = vmatpush1.bf16.msra.mxu0 %v4637_v2  ;;  %2916 = vmatprep.subr.bf16.mxu1 %v4642_v3  ;;  %v4731_v2 = vld [vmem:[%s5309_s24 + $0xab4] ss:$8 sps:$4 sm:$0xff]   ;;  %v4729_v3 = vld [vmem:[%s5309_s24 + $0xab0] ss:$8 sps:$4 sm:$0xff]  }
 0x1bd   : > { %3121 = vmatprep.subr.bf16.mxu0 %v4645_v4  ;;  %v4734_v4 = vld [vmem:[%s5309_s24 + $0xac4] ss:$8 sps:$4 sm:$0xff]  }
 0x1bf   : > { %2917 = vmatpush1.bf16.msra.mxu1 %v4640_v5  ;;  %v4732_v5 = vld [vmem:[%s5309_s24 + $0xac0] ss:$8 sps:$4 sm:$0xff]  }
 0x1c0   : > { %3122 = vmatpush1.bf16.msra.mxu0 %v4643_v6  ;;  %2918 = vmatprep.subr.bf16.mxu1 %v4648_v7  ;;  %v4737_v6 = vld [vmem:[%s5309_s24 + $0xad4] ss:$8 sps:$4 sm:$0xff]   ;;  %v4735_v7 = vld [vmem:[%s5309_s24 + $0xad0] ss:$8 sps:$4 sm:$0xff]  }
 0x1c1   : > { %3123 = vmatprep.subr.bf16.mxu0 %v4651_v8  ;;  %v4740_v8 = vld [vmem:[%s5309_s24 + $0xae4] ss:$8 sps:$4 sm:$0xff]  }
 0x1c3   : > { %2919 = vmatpush1.bf16.msra.mxu1 %v4646_v9  ;;  %v4738_v9 = vld [vmem:[%s5309_s24 + $0xae0] ss:$8 sps:$4 sm:$0xff]  }
 0x1c4   : > { %3124 = vmatpush1.bf16.msra.mxu0 %v4649_v10  ;;  %2920 = vmatprep.subr.bf16.mxu1 %v4654_v11  ;;  %v4743_v10 = vld [vmem:[%s5309_s24 + $0xaf4] ss:$8 sps:$4 sm:$0xff]  }
 0x1c5   : > { %3125 = vmatprep.subr.bf16.mxu0 %v4657_v12  ;;  %v5735_v11 = vld [vmem:[#allocation2 + $0x58] sm:$0xff] }
 0x1c6   : > { %v4741_v12 = vld [vmem:[%s5309_s24 + $0xaf0] ss:$8 sps:$4 sm:$0xff]  }
 0x1c7   : > { %2921 = vmatpush1.bf16.msra.mxu1 %v4652_v13  ;;  %v385_v13 = vcombine.high %v5735_v11, %v5735_v11 }
 0x1c8   : > { %3126 = vmatpush1.bf16.msra.mxu0 %v4655_v14  ;;  %2922 = vmatprep.subr.bf16.mxu1 %v4660_v15  ;;  %v4747_v14 = vld [vmem:[%s5309_s24 + $0xb04] ss:$8 sps:$4 sm:$0xff]   ;;  %v418_v15 = vpack.c.bf16 %v5694_v41, %v5694_v41  ;;  %v4802_v41 = vld [vmem:[%s5317_s28 + $0x24] ss:$8 sps:$4 sm:$0xff]  }
 0x1c9   : > { %3127 = vmatprep.subr.bf16.mxu0 %v4663_v16  ;;  %v4745_v16 = vld [vmem:[%s5309_s24 + $0xb00] ss:$8 sps:$4 sm:$0xff]  }
 0x1cb   : > { %2923 = vmatpush1.bf16.msra.mxu1 %v4658_v17  ;;  %v421_v17 = vpack.c.bf16 %v385_v13, %v385_v13  ;;  %v4838_v13 = vld [vmem:[%s5317_s28 + $0xe4] ss:$8 sps:$4 sm:$0xff]  }
 0x1cc   : > { %3128 = vmatpush1.bf16.msra.mxu0 %v4661_v18  ;;  %2924 = vmatprep.subr.bf16.mxu1 %v4666_v19  ;;  %v4750_v18 = vld [vmem:[%s5309_s24 + $0xb14] ss:$8 sps:$4 sm:$0xff]   ;;  %v4748_v19 = vld [vmem:[%s5309_s24 + $0xb10] ss:$8 sps:$4 sm:$0xff]  }
 0x1cd   : > { %3129 = vmatprep.subr.bf16.mxu0 %v4669_v20  ;;  %v4753_v20 = vld [vmem:[%s5309_s24 + $0xb24] ss:$8 sps:$4 sm:$0xff]  }
 0x1cf   : > { %2925 = vmatpush1.bf16.msra.mxu1 %v4664_v21  ;;  %v4751_v21 = vld [vmem:[%s5309_s24 + $0xb20] ss:$8 sps:$4 sm:$0xff]  }
 0x1d0   : > { %3130 = vmatpush1.bf16.msra.mxu0 %v4667_v22  ;;  %2926 = vmatprep.subr.bf16.mxu1 %v4672_v27  ;;  %v4756_v22 = vld [vmem:[%s5309_s24 + $0xb34] ss:$8 sps:$4 sm:$0xff]   ;;  %v4754_v27 = vld [vmem:[%s5309_s24 + $0xb30] ss:$8 sps:$4 sm:$0xff]  }
 0x1d1   : > { %3131 = vmatprep.subr.bf16.mxu0 %v4675_v28  ;;  %v4759_v28 = vld [vmem:[%s5309_s24 + $0xb44] ss:$8 sps:$4 sm:$0xff]  }
 0x1d3   : > { %2927 = vmatpush1.bf16.msra.mxu1 %v4670_v29  ;;  %v4757_v29 = vld [vmem:[%s5309_s24 + $0xb40] ss:$8 sps:$4 sm:$0xff]  }
 0x1d4   : > { %3132 = vmatpush1.bf16.msra.mxu0 %v4673_v30  ;;  %2928 = vmatprep.subr.bf16.mxu1 %v4678_v31  ;;  %v4762_v30 = vld [vmem:[%s5309_s24 + $0xb54] ss:$8 sps:$4 sm:$0xff]   ;;  %v4760_v31 = vld [vmem:[%s5309_s24 + $0xb50] ss:$8 sps:$4 sm:$0xff]  }
 0x1d5   : > { %3133 = vmatprep.subr.bf16.mxu0 %v4681_v32  ;;  %v4765_v32 = vld [vmem:[%s5309_s24 + $0xb64] ss:$8 sps:$4 sm:$0xff]  }
 0x1d7   : > { %2929 = vmatpush1.bf16.msra.mxu1 %v4676_v35  ;;  %v4763_v35 = vld [vmem:[%s5309_s24 + $0xb60] ss:$8 sps:$4 sm:$0xff]  }
 0x1d8   : > { %3134 = vmatpush1.bf16.msra.mxu0 %v4679_v36  ;;  %2930 = vmatprep.subr.bf16.mxu1 %v4684_v37  ;;  %v4768_v36 = vld [vmem:[%s5309_s24 + $0xb74] ss:$8 sps:$4 sm:$0xff]   ;;  %v4794_v37 = vld [vmem:[%s5317_s28] ss:$8 sps:$4 sm:$0xff]  }
 0x1d9   : > { %3135 = vmatprep.subr.bf16.mxu0 %v4687_v38  ;;  %v4796_v38 = vld [vmem:[%s5317_s28 + $0x4] ss:$8 sps:$4 sm:$0xff]  }
 0x1db   : > { %2931 = vmatpush1.bf16.msra.mxu1 %v4682_v23  ;;  %v4799_v23 = vld [vmem:[%s5317_s28 + $0x14] ss:$8 sps:$4 sm:$0xff]  }
 0x1dc   : > { %3136 = vmatpush1.bf16.msra.mxu0 %v4685_v39  ;;  %2932 = vmatprep.subr.bf16.mxu1 %v4690_v25  ;;  %v4766_v39 = vld [vmem:[%s5309_s24 + $0xb70] ss:$8 sps:$4 sm:$0xff]   ;;  %v4797_v25 = vld [vmem:[%s5317_s28 + $0x10] ss:$8 sps:$4 sm:$0xff]  }
 0x1dd   : > { %3137 = vmatprep.subr.bf16.mxu0 %v4693_v40  ;;  %v4771_v40 = vld [vmem:[%s5309_s24 + $0xb84] ss:$8 sps:$4 sm:$0xff]  }
 0x1df   : > { %2933 = vmatpush1.bf16.msra.mxu1 %v4688_v42  ;;  %v4769_v42 = vld [vmem:[%s5309_s24 + $0xb80] ss:$8 sps:$4 sm:$0xff]  }
 0x1e0   : > { %3138 = vmatpush1.bf16.msra.mxu0 %v4691_v43  ;;  %3427 = vmatprep.subr.bf16.mxu1 %v4796_v38  ;;  %v4800_v43 = vld [vmem:[%s5317_s28 + $0x20] ss:$8 sps:$4 sm:$0xff]  }
 0x1e1   : > { %3148 = vmatprep.subr.bf16.mxu0 %v4698_v45  ;;  %v4805_v45 = vld [vmem:[%s5317_s28 + $0x34] ss:$8 sps:$4 sm:$0xff]  }
 0x1e2   : > { %2935 = vmatmul.mubr.bf16.vlgmr.msra.gmra.mrb[0].mxu1 %v406_v46  ;;  %v4772_v46 = vld [vmem:[%s5309_s24 + $0xb90] ss:$8 sps:$4 sm:$0xff]  }
 0x1e3   : > { %3140 = vmatmul.mubr.bf16.vlgmr.msra.gmra.mrb[0].mxu0 %v416_v24  ;;  %3428 = vmatpush1.bf16.msra.mxu1 %v4794_v37  ;;  %v4803_v24 = vld [vmem:[%s5317_s28 + $0x30] ss:$8 sps:$4 sm:$0xff]  }
 0x1e4   : > { %3149 = vmatpush1.bf16.msra.mxu0 %v4696_v26  ;;  %3180 = vmatprep.mubr.bf16.mxu0 %v419_v47  ;;  %v4777_v26 = vld [vmem:[%s5309_s24 + $0xba4] ss:$8 sps:$4 sm:$0xff]   ;;  %v4808_v47 = vld [vmem:[%s5317_s28 + $0x44] ss:$8 sps:$4 sm:$0xff]  }
 0x1e5   : > { %3150 = vmatprep.subr.bf16.mxu0 %v4701_v48  ;;  %3429 = vmatprep.subr.bf16.mxu1 %v4799_v23  ;;  %v4775_v48 = vld [vmem:[%s5309_s24 + $0xba0] ss:$8 sps:$4 sm:$0xff]  }
 0x1e7   : > { %3430 = vmatpush1.bf16.msra.mxu1 %v4797_v25 }
 0x1e8   : > { %3151 = vmatpush1.bf16.msra.mxu0 %v4699_v49  ;;  %3431 = vmatprep.subr.bf16.mxu1 %v4802_v41  ;;  %v4806_v49 = vld [vmem:[%s5317_s28 + $0x40] ss:$8 sps:$4 sm:$0xff]  }
 0x1e9   : > { %3152 = vmatprep.subr.bf16.mxu0 %v4704_v33  ;;  %v4780_v33 = vld [vmem:[%s5309_s24 + $0xbb4] ss:$8 sps:$4 sm:$0xff]  }
 0x1eb   : > { %3432 = vmatpush1.bf16.msra.mxu1 %v4800_v43 }
 0x1ec   : > { %3153 = vmatpush1.bf16.msra.mxu0 %v4702_v34  ;;  %3433 = vmatprep.subr.bf16.mxu1 %v4805_v45  ;;  %v4811_v34 = vld [vmem:[%s5317_s28 + $0x54] ss:$8 sps:$4 sm:$0xff]  }
 0x1ed   : > { %3154 = vmatprep.subr.bf16.mxu0 %v4707_v50  ;;  %v4778_v50 = vld [vmem:[%s5309_s24 + $0xbb0] ss:$8 sps:$4 sm:$0xff]   ;;  %v3234_v45 = vld [vmem:[%s5328_s8] sm:$0xff] }
 0x1ef   : > { %3434 = vmatpush1.bf16.msra.mxu1 %v4803_v24 }
 0x1f0   : > { %3155 = vmatpush1.bf16.msra.mxu0 %v4705_v51  ;;  %3435 = vmatprep.subr.bf16.mxu1 %v4808_v47  ;;  %v4809_v51 = vld [vmem:[%s5317_s28 + $0x50] ss:$8 sps:$4 sm:$0xff]  }
 0x1f1   : > { %3156 = vmatprep.subr.bf16.mxu0 %v4710_v52  ;;  %v4783_v52 = vld [vmem:[%s5309_s24 + $0xbc4] ss:$8 sps:$4 sm:$0xff]  }
 0x1f3   : > { %3436 = vmatpush1.bf16.msra.mxu1 %v4806_v49 }
 0x1f4   : > { %3157 = vmatpush1.bf16.msra.mxu0 %v4708_v53  ;;  %3437 = vmatprep.subr.bf16.mxu1 %v4811_v34  ;;  %v4814_v53 = vld [vmem:[%s5317_s28 + $0x64] ss:$8 sps:$4 sm:$0xff]  }
 0x1f5   : > { %3158 = vmatprep.subr.bf16.mxu0 %v4713_v54  ;;  %v4781_v54 = vld [vmem:[%s5309_s24 + $0xbc0] ss:$8 sps:$4 sm:$0xff]  }
 0x1f7   : > { %3438 = vmatpush1.bf16.msra.mxu1 %v4809_v51 }
 0x1f8   : > { %3159 = vmatpush1.bf16.msra.mxu0 %v4711_v55  ;;  %v4812_v55 = vld [vmem:[%s5317_s28 + $0x60] ss:$8 sps:$4 sm:$0xff]   ;;  %3439 = vmatprep.subr.bf16.mxu1 %v4814_v53 }
 0x1f9   : > { %3160 = vmatprep.subr.bf16.mxu0 %v4716_v56  ;;  %v4786_v56 = vld [vmem:[%s5309_s24 + $0xbd4] ss:$8 sps:$4 sm:$0xff]  }
 0x1fb   : > { %3440 = vmatpush1.bf16.msra.mxu1 %v4812_v55 }
 0x1fc   : > { %3161 = vmatpush1.bf16.msra.mxu0 %v4714_v57  ;;  %v4817_v57 = vld [vmem:[%s5317_s28 + $0x74] ss:$8 sps:$4 sm:$0xff]  }
 0x1fd   : > { %3162 = vmatprep.subr.bf16.mxu0 %v4719_v58  ;;  %v4784_v58 = vld [vmem:[%s5309_s24 + $0xbd0] ss:$8 sps:$4 sm:$0xff]   ;;  %3441 = vmatprep.subr.bf16.mxu1 %v4817_v57 }
 0x200   : > { %3163 = vmatpush1.bf16.msra.mxu0 %v4717_v59  ;;  %v4815_v59 = vld [vmem:[%s5317_s28 + $0x70] ss:$8 sps:$4 sm:$0xff]  }
 0x201   : > { %3164 = vmatprep.subr.bf16.mxu0 %v4722_v60  ;;  %v4789_v60 = vld [vmem:[%s5309_s24 + $0xbe4] ss:$8 sps:$4 sm:$0xff]   ;;  %3442 = vmatpush1.bf16.msra.mxu1 %v4815_v59 }
 0x204   : > { %3165 = vmatpush1.bf16.msra.mxu0 %v4720_v61  ;;  %v4820_v61 = vld [vmem:[%s5317_s28 + $0x84] ss:$8 sps:$4 sm:$0xff]  }
 0x205   : > { %3166 = vmatprep.subr.bf16.mxu0 %v4725_v62  ;;  %v4787_v62 = vld [vmem:[%s5309_s24 + $0xbe0] ss:$8 sps:$4 sm:$0xff]   ;;  %3443 = vmatprep.subr.bf16.mxu1 %v4820_v61 }
 0x208   : > { %3167 = vmatpush1.bf16.msra.mxu0 %v4723_v63  ;;  %v4818_v63 = vld [vmem:[%s5317_s28 + $0x80] ss:$8 sps:$4 sm:$0xff]  }
 0x209   : > { %3168 = vmatprep.subr.bf16.mxu0 %v4728_v0  ;;  %v4792_v0 = vld [vmem:[%s5309_s24 + $0xbf4] ss:$8 sps:$4 sm:$0xff]   ;;  %3444 = vmatpush1.bf16.msra.mxu1 %v4818_v63 }
 0x20c   : > { %3169 = vmatpush1.bf16.msra.mxu0 %v4726_v1  ;;  %v4823_v1 = vld [vmem:[%s5317_s28 + $0x94] ss:$8 sps:$4 sm:$0xff]  }
 0x20d   : > { %3170 = vmatprep.subr.bf16.mxu0 %v4731_v2  ;;  %v4790_v2 = vld [vmem:[%s5309_s24 + $0xbf0] ss:$8 sps:$4 sm:$0xff]   ;;  %3445 = vmatprep.subr.bf16.mxu1 %v4823_v1 }
 0x210   : > { %3171 = vmatpush1.bf16.msra.mxu0 %v4729_v3  ;;  %v4821_v3 = vld [vmem:[%s5317_s28 + $0x90] ss:$8 sps:$4 sm:$0xff]  }
 0x211   : > { %3172 = vmatprep.subr.bf16.mxu0 %v4734_v4  ;;  %v4826_v4 = vld [vmem:[%s5317_s28 + $0xa4] ss:$8 sps:$4 sm:$0xff]   ;;  %3446 = vmatpush1.bf16.msra.mxu1 %v4821_v3 }
 0x212   : > { %3447 = vmatprep.subr.bf16.mxu1 %v4826_v4 }
 0x214   : > { %3173 = vmatpush1.bf16.msra.mxu0 %v4732_v5  ;;  %v420_v5 = vpack.c.bf16 %v5735_v11, %v5735_v11  ;;  %v4833_v11 = vld [vmem:[%s5317_s28 + $0xd0] ss:$8 sps:$4 sm:$0xff]  }
 0x215   : > { %3174 = vmatprep.subr.bf16.mxu0 %v4737_v6  ;;  %v4824_v6 = vld [vmem:[%s5317_s28 + $0xa0] ss:$8 sps:$4 sm:$0xff]  }
 0x216   : > { %3448 = vmatpush1.bf16.msra.mxu1 %v4824_v6 }
 0x218   : > { %3175 = vmatpush1.bf16.msra.mxu0 %v4735_v7  ;;  %v4829_v7 = vld [vmem:[%s5317_s28 + $0xb4] ss:$8 sps:$4 sm:$0xff]  }
 0x219   : > { %3176 = vmatprep.subr.bf16.mxu0 %v4740_v8  ;;  %v4827_v8 = vld [vmem:[%s5317_s28 + $0xb0] ss:$8 sps:$4 sm:$0xff]   ;;  %3449 = vmatprep.subr.bf16.mxu1 %v4829_v7 }
 0x21a   : > { %3450 = vmatpush1.bf16.msra.mxu1 %v4827_v8 }
 0x21c   : > { %3177 = vmatpush1.bf16.msra.mxu0 %v4738_v9  ;;  %v4832_v9 = vld [vmem:[%s5317_s28 + $0xc4] ss:$8 sps:$4 sm:$0xff]  }
 0x21d   : > { %3178 = vmatprep.subr.bf16.mxu0 %v4743_v10  ;;  %v4830_v10 = vld [vmem:[%s5317_s28 + $0xc0] ss:$8 sps:$4 sm:$0xff]   ;;  %3451 = vmatprep.subr.bf16.mxu1 %v4832_v9 }
 0x21e   : > { %3452 = vmatpush1.bf16.msra.mxu1 %v4830_v10 }
 0x220   : > { %3179 = vmatpush1.bf16.msra.mxu0 %v4741_v12  ;;  %v4835_v12 = vld [vmem:[%s5317_s28 + $0xd4] ss:$8 sps:$4 sm:$0xff]  }
 0x221   : > { %3189 = vmatprep.subr.bf16.mxu0 %v4747_v14  ;;  %3453 = vmatprep.subr.bf16.mxu1 %v4835_v12 }
 0x222   : > { %3454 = vmatpush1.bf16.msra.mxu1 %v4833_v11 }
 0x223   : > { %3181 = vmatmul.mubr.bf16.vlgmr.msra.gmra.mrb[0].mxu0 %v418_v15  ;;  %v4836_v15 = vld [vmem:[%s5317_s28 + $0xe0] ss:$8 sps:$4 sm:$0xff]   ;;  %3455 = vmatprep.subr.bf16.mxu1 %v4838_v13 }
 0x224   : > { %3190 = vmatpush1.bf16.msra.mxu0 %v4745_v16  ;;  %3221 = vmatprep.mubr.bf16.mxu0 %v421_v17 }
 0x225   : > { %3191 = vmatprep.subr.bf16.mxu0 %v4750_v18 }
 0x226   : > { %3456 = vmatpush1.bf16.msra.mxu1 %v4836_v15 }
 0x228   : > { %3192 = vmatpush1.bf16.msra.mxu0 %v4748_v19  ;;  %v4841_v19 = vld [vmem:[%s5317_s28 + $0xf4] ss:$8 sps:$4 sm:$0xff]  }
 0x229   : > { %3193 = vmatprep.subr.bf16.mxu0 %v4753_v20  ;;  %v4839_v20 = vld [vmem:[%s5317_s28 + $0xf0] ss:$8 sps:$4 sm:$0xff]   ;;  %3457 = vmatprep.subr.bf16.mxu1 %v4841_v19 }
 0x22a   : > { %3458 = vmatpush1.bf16.msra.mxu1 %v4839_v20 }
 0x22c   : > { %3194 = vmatpush1.bf16.msra.mxu0 %v4751_v21  ;;  %v808_v21 = vlaneseq }
 0x22d   : > { %3195 = vmatprep.subr.bf16.mxu0 %v4756_v22 }
 0x22e   : > { %v809_v22 = vshrl.u32 %v808_v21, 7 }
 0x230   : > { %3196 = vmatpush1.bf16.msra.mxu0 %v4754_v27  ;;  %v810_v27 = vsub.s32 0, %v809_v22 }
 0x231   : > { %3197 = vmatprep.subr.bf16.mxu0 %v4759_v28  ;;  %v806_v28 = vld [vmem:[%s5315_s11] sm:$0x3] }
 0x234   : > { %3198 = vmatpush1.bf16.msra.mxu0 %v4757_v29  ;;  %v814_v29 = vsub.s32 1, %v809_v22 }
 0x235   : > { %3199 = vmatprep.subr.bf16.mxu0 %v4762_v30  ;;  %v811_v30 = vrot.slane %v806_v28, %v810_v27 }
 0x238   : > { %3200 = vmatpush1.bf16.msra.mxu0 %v4760_v31  ;;  %v815_v31 = vrot.slane %v806_v28, %v814_v29 }
 0x239   : > { %3201 = vmatprep.subr.bf16.mxu0 %v4765_v32 }
 0x23c   : > { %3202 = vmatpush1.bf16.msra.mxu0 %v4763_v35 }
 0x23d   : > { %3203 = vmatprep.subr.bf16.mxu0 %v4768_v36 }
 0x240   : > { %3204 = vmatpush1.bf16.msra.mxu0 %v4766_v39 }
 0x241   : > { %3205 = vmatprep.subr.bf16.mxu0 %v4771_v40 }
 0x244   : > { %3206 = vmatpush1.bf16.msra.mxu0 %v4769_v42 }
 0x245   : > { %3207 = vmatprep.subr.bf16.mxu0 %v4774_v44 }
 0x248   : > { %3208 = vmatpush1.bf16.msra.mxu0 %v4772_v46 }
 0x249   : > { %3209 = vmatprep.subr.bf16.mxu0 %v4777_v26 }
 0x24c   : > { %3210 = vmatpush1.bf16.msra.mxu0 %v4775_v48 }
 0x24d   : > { %3211 = vmatprep.subr.bf16.mxu0 %v4780_v33 }
 0x250   : > { %3212 = vmatpush1.bf16.msra.mxu0 %v4778_v50 }
 0x251   : > { %3213 = vmatprep.subr.bf16.mxu0 %v4783_v52 }
 0x254   : > { %3214 = vmatpush1.bf16.msra.mxu0 %v4781_v54 }
 0x255   : > { %3215 = vmatprep.subr.bf16.mxu0 %v4786_v56 }
 0x258   : > { %3216 = vmatpush1.bf16.msra.mxu0 %v4784_v58 }
 0x259   : > { %3217 = vmatprep.subr.bf16.mxu0 %v4789_v60 }
 0x25c   : > { %3218 = vmatpush1.bf16.msra.mxu0 %v4787_v62 }
 0x25d   : > { %3219 = vmatprep.subr.bf16.mxu0 %v4792_v0 }
 0x260   : > { %3220 = vmatpush1.bf16.msra.mxu0 %v4790_v2 }
 0x263   : > { %3222 = vmatmul.mubr.bf16.vlgmr.msra.gmra.mrb[0].mxu0 %v420_v5 }
 0x2b5   : > { %v2936_v14 = vpop.f32.mrb[0].mxu1 }
 0x2b6   : > { %v2938_v16 = vpop.f32.mrb[1].mxu1  ;;  %v4064_v32 = vadd.f32 %v2936_v14, %v811_v30 }
 0x2b7   : > { %v2940_v17 = vpop.f32.mrb[2].mxu1  ;;  %v4066_v35 = vadd.f32 %v2938_v16, %v815_v31 }
 0x2b8   : > { %v2941_v18 = vpop.f32.mrb[3].mxu1 }
 0x336   : > { %v3223_v36 = vpop.f32.mrb[0].mxu0 }
 0x337   : > { %v4065_v37 = vadd.f32 %v4064_v32, %v3223_v36  ;;  %v3225_v38 = vpop.f32.mrb[1].mxu0 }
 0x338   : > { %v4067_v23 = vadd.f32 %v4066_v35, %v3225_v38  ;;  %v3227_v39 = vpop.f32.mrb[2].mxu0 }
 0x339   : > { %v3230_v25 = vmax.f32 %v4065_v37, 0.0  ;;  %v3228_v40 = vpop.f32.mrb[3].mxu0 }
 0x33a   : > { %v3231_v41 = vmax.f32 %v4067_v23, 0.0 }
 0x33b   : > { %v3232_v43 = vpack.c.bf16 %v3230_v25, %v3230_v25 }
 0x33c   : > { %v3233_v42 = vpack.c.bf16 %v3231_v41, %v3231_v41 }
 0x33e   : > { %3459 = vmatprep.mubr.bf16.mxu1 %v3233_v42 }
 0x33f   : > { %3460 = vmatmul.mubr.bf16.vlgmr.msra.gmra.mrb[4].mxu1 %v3232_v43 }
 0x412   : > { %v3461_v44 = vpop.f32.mrb[4].mxu1 }
 0x413   : > { %v3463_v46 = vpop.f32.mrb[5].mxu1 }
 0x414   : > { %v3470_v24 = vcombine.low %v3461_v44, %v3463_v46  ;;  %v3465_v26 = vpop.f32.mrb[6].mxu1 }
 0x415   : > { %v3466_v47 = vpop.f32.mrb[7].mxu1 }
 0x416   : > { %v3472_v48 = vadd.f32 %v3470_v24, %v3234_v45 }
 0x418   : > { %3473 = vst [vmem:[%s5328_s8] sm:$0xff] %v3472_v48 }
 0x419 PF: > { %s21_s22 = sadd.s32 1, %s5034_s22   ;;  %s5877_s18 = sld [smem:[#allocation16_spill]] }
 0x41a   : > { %p18_p2 = scmp.ge.s32.totalorder %s21_s22, 6   ;;  %s5878_s19 = sld [smem:[#allocation12_spill]] }
 0x41b   : > { %s5879_s29 = sld [smem:[#allocation13_spill]]  ;;  %s5880_s20 = sld [smem:[#allocation14_spill]] }
 0x41c   : > { %s5881_s21 = sld [smem:[#allocation15_spill]]  ;;  %s5882_s15 = smov %s5010_s16 }
 0x41d   : > { %s5883_s16 = smov %s5014_s17  ;;  %20 = sbr.rel (!%p18_p2) target bundleno = 10 (0xa), region = 109 }
 0x41f   : > { %s5884_s17 = smov %s5877_s18 }
 0x420   : > { %s5885_s18 = smov %s5878_s19 }
 0x421   : > { %s5886_s19 = smov %s5879_s29 }
 0x424   :  { %3495 = vsyncpa [#allocation3], 1 }
 0x425   :  { %3497 = vsyncpa [#allocation3 + $0x1], 1 }
 0x426   :  { %3498 = vsyncpa [#allocation5], 1 }
 0x427   :  { %3500 = vsyncpa [#allocation5 + $0x1], 1 }
 0x428   :  { %3501 = vsyncpa [#allocation8], 1 }
 0x429   :  { %3503 = vsyncpa [#allocation8 + $0x1], 1 }

</bundles_post_ra>
